<compile_context>
chip_gen: v7x
topology: tpu7x:2x2x1
jax: 0.10.0
libtpu: 0.0.40
codegen_flags: <defaults>
</compile_context>

<pallas_src>
import functools
import math

import jax
import jax.numpy as jnp
from jax.experimental import pallas as pl
from jax.experimental.pallas import tpu as pltpu

LN_EPS = 1e-5  # PyTorch nn.LayerNorm default


# ----------------------------- shared math -----------------------------------

def _layernorm(y, gamma, beta):
    mean = jnp.mean(y, axis=-1, keepdims=True)
    var = jnp.mean((y - mean) ** 2, axis=-1, keepdims=True)
    return (y - mean) * jax.lax.rsqrt(var + LN_EPS) * gamma + beta


# ----------------------------- fused kernel ----------------------------------

def _fused_kernel(num_heads, num_steps, ffn_chunks, compute_dtype, *refs):
    """One grid step = one batch element b: temporal(last-q) -> spatial -> FFN."""
    f32 = jnp.float32
    cd = compute_dtype
    T = num_steps
    H = num_heads

    x_refs = refs[:T]                                   # T refs of (N, D)
    (wq_t, bq_t, wkv_t, bkv_t, wo_t, bo_t, g_t, be_t,
     seg_r,
     wqkv_s, bqkv_s, wo_s, bo_s, g_s, be_s,
     w1_r, b1_r, w2_r, b2_r, g_f, be_f, o_ref) = refs[T:]

    x_last = x_refs[T - 1][...].astype(f32)             # (N, D)
    N, D = x_last.shape
    hd = D // H
    scale = 1.0 / math.sqrt(hd)

    def mm(a, b):
        # weights are already in compute_dtype; .astype on matching dtype is a no-op
        return jnp.dot(a.astype(cd), b.astype(cd), preferred_element_type=f32)

    def dot_nt(a, b):                                    # a @ b.T (contract last dims)
        return jax.lax.dot_general(a.astype(cd), b.astype(cd),
                                   (((1,), (1,)), ((), ())),
                                   preferred_element_type=f32)

    def expand_heads(w):
        # (rows, H) -> (rows, D): repeat each head's weight across its hd lanes.
        # Pure lane broadcast + concat (VPU/XLU), no MXU.
        rows = w.shape[0]
        return jnp.concatenate(
            [jnp.broadcast_to(w[:, h:h + 1], (rows, hd)) for h in range(H)],
            axis=-1)

    # ---------------- temporal attention (last-timestep query only) ----------
    # Stack timesteps along rows once: fuses the T K/V projections and the T
    # per-head segment-sum score matmuls into single MXU calls.
    x_all = jnp.concatenate(
        [x_last if t == T - 1 else x_refs[t][...].astype(f32) for t in range(T)],
        axis=0)                                          # (T*N, D)

    q_last = mm(x_last, wq_t[...]) + bq_t[...]           # (N, D)
    kv_all = mm(x_all, wkv_t[...]) + bkv_t[...]          # (T*N, 2D) fused K/V proj
    k_all = kv_all[:, :D]
    v_all = kv_all[:, D:]

    q_rep = jnp.concatenate([q_last] * T, axis=0)        # (T*N, D)
    # per-head scores via ONE segment-sum matmul: s[t*N+n, h] = q_h(n) . k_h(t,n)
    s_all = mm(q_rep * k_all, seg_r[...]) * scale        # (T*N, H)

    s_list = [s_all[t * N:(t + 1) * N, :] for t in range(T)]
    m = s_list[0]
    for t in range(1, T):
        m = jnp.maximum(m, s_list[t])
    e_list = [jnp.exp(s - m) for s in s_list]
    denom = e_list[0]
    for t in range(1, T):
        denom = denom + e_list[t]
    # approx reciprocal (EUP slot): ~1e-3 relative error vs exact softmax.
    inv = pl.reciprocal(denom, approx=True)              # (N, H)

    w_all = jnp.concatenate([e * inv for e in e_list], axis=0)   # (T*N, H)
    wv = expand_heads(w_all) * v_all                     # (T*N, D), no MXU
    ctx = wv[0:N, :]
    for t in range(1, T):
        ctx = ctx + wv[t * N:(t + 1) * N, :]

    attn_t = mm(ctx, wo_t[...]) + bo_t[...]
    h1 = _layernorm(x_last + attn_t, g_t[...], be_t[...])       # temporal_norm

    # ---------------- spatial attention (full self-attention over N) ---------
    qkv = mm(h1, wqkv_s[...]) + bqkv_s[...]                      # (N, 3D) fused QKV
    attn_s = None
    for h in range(H):
        qh = qkv[:, h * hd:(h + 1) * hd]
        kh = qkv[:, D + h * hd:D + (h + 1) * hd]
        vh = qkv[:, 2 * D + h * hd:2 * D + (h + 1) * hd]
        sc = dot_nt(qh, kh) * scale                              # (N, N)
        sc = sc - jnp.max(sc, axis=-1, keepdims=True)
        p = jnp.exp(sc)
        p = p * pl.reciprocal(jnp.sum(p, axis=-1, keepdims=True), approx=True)
        ctx_h = mm(p, vh)                                        # (N, hd)
        # accumulate through the row-sliced output projection (no lane concat)
        contrib = mm(ctx_h, wo_s[h * hd:(h + 1) * hd, :])        # (N, D)
        attn_s = contrib if attn_s is None else attn_s + contrib
    attn_s = attn_s + bo_s[...]
    h2 = _layernorm(h1 + attn_s, g_s[...], be_s[...])            # spatial_norm

    # ---------------- FFN (hidden dim chunked) --------------------------------
    Dh = w1_r.shape[1]
    ck = Dh // ffn_chunks
    y = None
    for c in range(ffn_chunks):
        hid = jnp.maximum(
            mm(h2, w1_r[:, c * ck:(c + 1) * ck]) + b1_r[:, c * ck:(c + 1) * ck],
            0.0)
        part = mm(hid, w2_r[c * ck:(c + 1) * ck, :])
        y = part if y is None else y + part
    y = y + b2_r[...]
    out = _layernorm(h2 + y, g_f[...], be_f[...])                # ffn_norm
    o_ref[...] = out.astype(o_ref.dtype)


# ----------------------------- wrapper ----------------------------------------

def _ceil_to(a, b):
    return -(-a // b) * b


def _padded_bytes(shape, itemsize=4):
    shape = tuple(int(s) for s in shape)
    if len(shape) < 2:
        shape = (1,) * (2 - len(shape)) + shape
    lead = 1
    for s in shape[:-2]:
        lead *= s
    return lead * _ceil_to(shape[-2], 8) * _ceil_to(shape[-1], 128) * itemsize


def _pick_ffn_chunks(Dh):
    # largest chunk count (<=4) keeping each chunk lane-aligned (multiple of 128)
    for c in (4, 2, 1):
        if Dh % c == 0 and (Dh // c) % 128 == 0:
            return c
    return 1


def _vmem_capacity_bytes():
    try:
        return int(pltpu.get_tpu_info().vmem_capacity_bytes)
    except Exception:
        return 128 << 20   # v5e/v6e default; v7x handled by the headroom below


def _vmem_budget(T, N, D, ffn_chunks, params):
    io = (T + 1) * _padded_bytes((N, D))                      # x blocks + out block
    par = sum(_padded_bytes(p.shape, p.dtype.itemsize)        # single-buffered weights
              for p in params)
    inter = (_padded_bytes((T * N, 2 * D))                    # temporal K/V
             + 2 * _padded_bytes((T * N, D))                  # stacked x / weighted V
             + _padded_bytes((N, 3 * D))                      # spatial QKV
             + 2 * _padded_bytes((N, N))                      # spatial scores
             + _padded_bytes((N, max(128, 4 * D // ffn_chunks)))  # FFN hidden chunk
             + 8 * _padded_bytes((N, D)))                     # misc activations
    total = 2 * io + par + inter + (8 << 20)   # x2: double-buffered I/O blocks;
                                               # +slack for Mosaic scratch/spills
    cap = _vmem_capacity_bytes() - (12 << 20)  # leave headroom (v7x only has 64 MiB)
    return int(max(min(total, cap), 1 << 20))


def temporal_spatial_fusion(vfeatures_list, kernel_params, num_heads,
                            compute_dtype=jnp.bfloat16):
    T = len(vfeatures_list)
    B, N, D = vfeatures_list[0].shape
    ffn_chunks = _pick_ffn_chunks(4 * D)

    x_spec = pl.BlockSpec((None, N, D), lambda b: (b, 0, 0))
    # Constant weights: whole-array, VMEM-resident, single-buffered (their block
    # never changes across the grid, so pipelined double-buffering is pure waste).
    const_specs = [pl.BlockSpec(memory_space=pltpu.MemorySpace.VMEM)
                   for _ in kernel_params]

    kernel = functools.partial(_fused_kernel, num_heads, T, ffn_chunks,
                               compute_dtype)
    return pl.pallas_call(
        kernel,
        out_shape=jax.ShapeDtypeStruct((B, N, D), vfeatures_list[0].dtype),
        grid_spec=pltpu.PrefetchScalarGridSpec(
            num_scalar_prefetch=0,
            grid=(B,),                      # B >= 2 keeps both v7x TCs busy
            in_specs=[x_spec] * T + const_specs,
            out_specs=pl.BlockSpec((None, N, D), lambda b: (b, 0, 0))),
        compiler_params=pltpu.CompilerParams(
            dimension_semantics=("parallel",),
            vmem_limit_bytes=_vmem_budget(T, N, D, ffn_chunks, kernel_params)),
    )(*vfeatures_list, *kernel_params)


# ----------------------------- module ------------------------------------------

def _init_attn_params(key, D):
    ks = jax.random.split(key, 10)
    sw = 1.0 / math.sqrt(D)
    w = lambda k: jax.random.normal(k, (D, D), jnp.float32) * sw
    b = lambda k: jax.random.normal(k, (1, D), jnp.float32) * 0.02
    return dict(wq=w(ks[0]), wk=w(ks[1]), wv=w(ks[2]), wo=w(ks[3]),
                bq=b(ks[4]), bk=b(ks[5]), bv=b(ks[6]), bo=b(ks[7]),
                gamma=1.0 + 0.1 * jax.random.normal(ks[8], (1, D), jnp.float32),
                beta=0.1 * jax.random.normal(ks[9], (1, D), jnp.float32))


def _init_ffn_params(key, D):
    ks = jax.random.split(key, 6)
    Dh = 4 * D
    return dict(
        w1=jax.random.normal(ks[0], (D, Dh), jnp.float32) / math.sqrt(D),
        w2=jax.random.normal(ks[1], (Dh, D), jnp.float32) / math.sqrt(Dh),
        b1=jax.random.normal(ks[2], (1, Dh), jnp.float32) * 0.02,
        b2=jax.random.normal(ks[3], (1, D), jnp.float32) * 0.02,
        gamma=1.0 + 0.1 * jax.random.normal(ks[4], (1, D), jnp.float32),
        beta=0.1 * jax.random.normal(ks[5], (1, D), jnp.float32))


class TemporalSpatialFusionPallas:
    def __init__(self, feature_dim=256, num_heads=8, num_layers=2, key=None,
                 compute_dtype=jnp.bfloat16):
        # compute_dtype=bf16 is the MXU fast path on v5e/v6e/v7x (accumulation
        # and all LayerNorm/softmax math stay f32). Use f32 only for strict
        # numeric parity checks (as in the demo below).
        assert feature_dim % num_heads == 0
        self.feature_dim = feature_dim
        self.num_heads = num_heads
        self.compute_dtype = compute_dtype
        if key is None:
            key = jax.random.PRNGKey(0)
        k1, k2, k3 = jax.random.split(key, 3)
        self.p_temporal = _init_attn_params(k1, feature_dim)
        self.p_spatial = _init_attn_params(k2, feature_dim)
        self.p_ffn = _init_ffn_params(k3, feature_dim)

        D, H = feature_dim, num_heads
        hd = D // H
        cd = compute_dtype
        pt, ps, pf = self.p_temporal, self.p_spatial, self.p_ffn
        # Fused projections (done once at init, free at call time).
        wkv_t = jnp.concatenate([pt["wk"], pt["wv"]], axis=1)             # (D, 2D)
        bkv_t = jnp.concatenate([pt["bk"], pt["bv"]], axis=1)             # (1, 2D)
        wqkv_s = jnp.concatenate([ps["wq"], ps["wk"], ps["wv"]], axis=1)  # (D, 3D)
        bqkv_s = jnp.concatenate([ps["bq"], ps["bk"], ps["bv"]], axis=1)  # (1, 3D)
        # Constant head segment-sum matrix for the temporal per-head scores.
        head_id = jnp.arange(D, dtype=jnp.int32) // hd
        seg = (head_id[:, None] == jnp.arange(H, dtype=jnp.int32)[None, :]
               ).astype(jnp.float32)                                       # (D, H)
        # Matmul weights pre-cast to compute_dtype (no per-step casts in-kernel,
        # halves their VMEM/DMA footprint when bf16). Biases / LN params are
        # consumed in f32 and stay f32.
        self._kernel_params = (
            pt["wq"].astype(cd), pt["bq"], wkv_t.astype(cd), bkv_t,
            pt["wo"].astype(cd), pt["bo"], pt["gamma"], pt["beta"],
            seg.astype(cd),
            wqkv_s.astype(cd), bqkv_s, ps["wo"].astype(cd), ps["bo"],
            ps["gamma"], ps["beta"],
            pf["w1"].astype(cd), pf["b1"], pf["w2"].astype(cd), pf["b2"],
            pf["gamma"], pf["beta"],
        )

    def __call__(self, vfeatures_list):
        return temporal_spatial_fusion(vfeatures_list, self._kernel_params,
                                       self.num_heads, self.compute_dtype)

    # ------------------- pure-JAX reference (mirrors PyTorch) ----------------
    def _mha_ref(self, x, p):
        Bt, S, D = x.shape
        H = self.num_heads
        hd = D // H
        q = (x @ p["wq"] + p["bq"]).reshape(Bt, S, H, hd)
        k = (x @ p["wk"] + p["bk"]).reshape(Bt, S, H, hd)
        v = (x @ p["wv"] + p["bv"]).reshape(Bt, S, H, hd)
        s = jnp.einsum('bqhd,bkhd->bhqk', q, k) / math.sqrt(hd)
        a = jax.nn.softmax(s, axis=-1)
        ctx = jnp.einsum('bhqk,bkhd->bqhd', a, v).reshape(Bt, S, D)
        return ctx @ p["wo"] + p["bo"]

    def reference(self, vfeatures_list):
        x = jnp.stack(vfeatures_list, axis=1)                  # (B, T, N, D)
        B, T, N, D = x.shape
        t = jnp.transpose(x, (0, 2, 1, 3)).reshape(B * N, T, D)
        pt, ps, pf = self.p_temporal, self.p_spatial, self.p_ffn
        t = _layernorm(t + self._mha_ref(t, pt), pt["gamma"], pt["beta"])
        cur = t[:, -1, :].reshape(B, N, D)
        cur = _layernorm(cur + self._mha_ref(cur, ps), ps["gamma"], ps["beta"])
        f = jnp.maximum(cur @ pf["w1"] + pf["b1"], 0.0) @ pf["w2"] + pf["b2"]
        return _layernorm(cur + f, pf["gamma"], pf["beta"])


# ----------------------------- main ---------------------------------------------

if __name__ == "__main__":
    B, T, N, D, H = 2, 4, 16, 32, 4   # small shapes (module default is D=256, H=8)
    key = jax.random.PRNGKey(0)
    k_model, k_data = jax.random.split(key)
    data_keys = jax.random.split(k_data, T)
    vfeatures_list = [jax.random.normal(data_keys[t], (B, N, D), jnp.float32)
                      for t in range(T)]

    # strict check in f32 against the pure-JAX reference
    model_f32 = TemporalSpatialFusionPallas(feature_dim=D, num_heads=H,
                                            key=k_model,
                                            compute_dtype=jnp.float32)
    out = jax.block_until_ready(model_f32(vfeatures_list))
    assert out.shape == (B, N, D)
    ref = model_f32.reference(vfeatures_list)
    max_err = float(jnp.max(jnp.abs(out - ref)))
    if max_err > 2e-2:
        raise SystemExit(f"f32 mismatch vs reference: max_err={max_err}")

    # default bf16 compute path (MXU fast path); loose sanity bound vs f32 ref
    model_bf16 = TemporalSpatialFusionPallas(feature_dim=D, num_heads=H,
                                             key=k_model)
    out_bf16 = jax.block_until_ready(model_bf16(vfeatures_list))
    max_err_bf16 = float(jnp.max(jnp.abs(out_bf16 - ref)))
    if max_err_bf16 > 2e-1:
        raise SystemExit(f"bf16 mismatch vs reference: max_err={max_err_bf16}")

    print("KERNEL_OK")
</pallas_src>

<mosaic_0001>
module attributes {stable_mosaic.version = 11 : i64} {
  func.func @_fused_kernel(%arg0: i32, %arg1: memref<1x16x32xf32, #tpu.memory_space<vmem>>, %arg2: memref<1x16x32xf32, #tpu.memory_space<vmem>>, %arg3: memref<1x16x32xf32, #tpu.memory_space<vmem>>, %arg4: memref<1x16x32xf32, #tpu.memory_space<vmem>>, %arg5: memref<32x32xf32, #tpu.memory_space<vmem>>, %arg6: memref<1x32xf32, #tpu.memory_space<vmem>>, %arg7: memref<32x64xf32, #tpu.memory_space<vmem>>, %arg8: memref<1x64xf32, #tpu.memory_space<vmem>>, %arg9: memref<32x32xf32, #tpu.memory_space<vmem>>, %arg10: memref<1x32xf32, #tpu.memory_space<vmem>>, %arg11: memref<1x32xf32, #tpu.memory_space<vmem>>, %arg12: memref<1x32xf32, #tpu.memory_space<vmem>>, %arg13: memref<32x4xf32, #tpu.memory_space<vmem>>, %arg14: memref<32x96xf32, #tpu.memory_space<vmem>>, %arg15: memref<1x96xf32, #tpu.memory_space<vmem>>, %arg16: memref<32x32xf32, #tpu.memory_space<vmem>>, %arg17: memref<1x32xf32, #tpu.memory_space<vmem>>, %arg18: memref<1x32xf32, #tpu.memory_space<vmem>>, %arg19: memref<1x32xf32, #tpu.memory_space<vmem>>, %arg20: memref<32x128xf32, #tpu.memory_space<vmem>>, %arg21: memref<1x128xf32, #tpu.memory_space<vmem>>, %arg22: memref<128x32xf32, #tpu.memory_space<vmem>>, %arg23: memref<1x32xf32, #tpu.memory_space<vmem>>, %arg24: memref<1x32xf32, #tpu.memory_space<vmem>>, %arg25: memref<1x32xf32, #tpu.memory_space<vmem>>, %arg26: memref<1x16x32xf32, #tpu.memory_space<vmem>>) attributes {dimension_semantics = [#tpu.dimension_semantics<parallel>], iteration_bounds = array<i64: 2>, scalar_prefetch = 0 : i64, scratch_operands = 0 : i64, tpu.core_type = #tpu.core_type<tc>, window_params = [{transform_indices = @transform_0, window_bounds = array<i64: 1, 16, 32>}, {transform_indices = @transform_1, window_bounds = array<i64: 1, 16, 32>}, {transform_indices = @transform_2, window_bounds = array<i64: 1, 16, 32>}, {transform_indices = @transform_3, window_bounds = array<i64: 1, 16, 32>}, {pipeline_mode = #tpu.pipeline_mode<synchronous>, transform_indices = @transform_4, window_bounds = array<i64: 32, 32>}, {pipeline_mode = #tpu.pipeline_mode<synchronous>, transform_indices = @transform_5, window_bounds = array<i64: 1, 32>}, {pipeline_mode = #tpu.pipeline_mode<synchronous>, transform_indices = @transform_6, window_bounds = array<i64: 32, 64>}, {pipeline_mode = #tpu.pipeline_mode<synchronous>, transform_indices = @transform_7, window_bounds = array<i64: 1, 64>}, {pipeline_mode = #tpu.pipeline_mode<synchronous>, transform_indices = @transform_8, window_bounds = array<i64: 32, 32>}, {pipeline_mode = #tpu.pipeline_mode<synchronous>, transform_indices = @transform_9, window_bounds = array<i64: 1, 32>}, {pipeline_mode = #tpu.pipeline_mode<synchronous>, transform_indices = @transform_10, window_bounds = array<i64: 1, 32>}, {pipeline_mode = #tpu.pipeline_mode<synchronous>, transform_indices = @transform_11, window_bounds = array<i64: 1, 32>}, {pipeline_mode = #tpu.pipeline_mode<synchronous>, transform_indices = @transform_12, window_bounds = array<i64: 32, 4>}, {pipeline_mode = #tpu.pipeline_mode<synchronous>, transform_indices = @transform_13, window_bounds = array<i64: 32, 96>}, {pipeline_mode = #tpu.pipeline_mode<synchronous>, transform_indices = @transform_14, window_bounds = array<i64: 1, 96>}, {pipeline_mode = #tpu.pipeline_mode<synchronous>, transform_indices = @transform_15, window_bounds = array<i64: 32, 32>}, {pipeline_mode = #tpu.pipeline_mode<synchronous>, transform_indices = @transform_16, window_bounds = array<i64: 1, 32>}, {pipeline_mode = #tpu.pipeline_mode<synchronous>, transform_indices = @transform_17, window_bounds = array<i64: 1, 32>}, {pipeline_mode = #tpu.pipeline_mode<synchronous>, transform_indices = @transform_18, window_bounds = array<i64: 1, 32>}, {pipeline_mode = #tpu.pipeline_mode<synchronous>, transform_indices = @transform_19, window_bounds = array<i64: 32, 128>}, {pipeline_mode = #tpu.pipeline_mode<synchronous>, transform_indices = @transform_20, window_bounds = array<i64: 1, 128>}, {pipeline_mode = #tpu.pipeline_mode<synchronous>, transform_indices = @transform_21, window_bounds = array<i64: 128, 32>}, {pipeline_mode = #tpu.pipeline_mode<synchronous>, transform_indices = @transform_22, window_bounds = array<i64: 1, 32>}, {pipeline_mode = #tpu.pipeline_mode<synchronous>, transform_indices = @transform_23, window_bounds = array<i64: 1, 32>}, {pipeline_mode = #tpu.pipeline_mode<synchronous>, transform_indices = @transform_24, window_bounds = array<i64: 1, 32>}, {transform_indices = @transform_25, window_bounds = array<i64: 1, 16, 32>}]} {
    %c0 = arith.constant 0 : index
    %c0_0 = arith.constant 0 : index
    %c0_1 = arith.constant 0 : index
    %0 = vector.load %arg4[%c0, %c0_0, %c0_1] : memref<1x16x32xf32, #tpu.memory_space<vmem>>, vector<1x16x32xf32>
    %1 = vector.shape_cast %0 : vector<1x16x32xf32> to vector<16x32xf32>
    %c0_2 = arith.constant 0 : index
    %c0_3 = arith.constant 0 : index
    %c0_4 = arith.constant 0 : index
    %2 = vector.load %arg1[%c0_2, %c0_3, %c0_4] : memref<1x16x32xf32, #tpu.memory_space<vmem>>, vector<1x16x32xf32>
    %3 = vector.shape_cast %2 : vector<1x16x32xf32> to vector<16x32xf32>
    %c0_5 = arith.constant 0 : index
    %c0_6 = arith.constant 0 : index
    %c0_7 = arith.constant 0 : index
    %4 = vector.load %arg2[%c0_5, %c0_6, %c0_7] : memref<1x16x32xf32, #tpu.memory_space<vmem>>, vector<1x16x32xf32>
    %5 = vector.shape_cast %4 : vector<1x16x32xf32> to vector<16x32xf32>
    %c0_8 = arith.constant 0 : index
    %c0_9 = arith.constant 0 : index
    %c0_10 = arith.constant 0 : index
    %6 = vector.load %arg3[%c0_8, %c0_9, %c0_10] : memref<1x16x32xf32, #tpu.memory_space<vmem>>, vector<1x16x32xf32>
    %7 = vector.shape_cast %6 : vector<1x16x32xf32> to vector<16x32xf32>
    %8 = tpu.concatenate %3, %5, %7, %1 in 0 : vector<16x32xf32>, vector<16x32xf32>, vector<16x32xf32>, vector<16x32xf32> -> vector<64x32xf32>
    %c0_11 = arith.constant 0 : index
    %c0_12 = arith.constant 0 : index
    %9 = vector.load %arg5[%c0_11, %c0_12] : memref<32x32xf32, #tpu.memory_space<vmem>>, vector<32x32xf32>
    %cst = arith.constant dense<0.000000e+00> : vector<16x32xf32>
    %10 = tpu.matmul %1, %9, %cst {dimension_numbers = #tpu.dot_dimension_numbers<[1], [0], [0], [1], [0, 0, 1, 1], [], []>} : vector<16x32xf32>, vector<32x32xf32>, vector<16x32xf32> -> vector<16x32xf32>
    %c0_13 = arith.constant 0 : index
    %c0_14 = arith.constant 0 : index
    %11 = vector.load %arg6[%c0_13, %c0_14] : memref<1x32xf32, #tpu.memory_space<vmem>>, vector<1x32xf32>
    %12 = vector.broadcast %11 : vector<1x32xf32> to vector<16x32xf32>
    %13 = arith.addf %10, %12 : vector<16x32xf32>
    %c0_15 = arith.constant 0 : index
    %c0_16 = arith.constant 0 : index
    %14 = vector.load %arg7[%c0_15, %c0_16] : memref<32x64xf32, #tpu.memory_space<vmem>>, vector<32x64xf32>
    %cst_17 = arith.constant dense<0.000000e+00> : vector<64x64xf32>
    %15 = tpu.matmul %8, %14, %cst_17 {dimension_numbers = #tpu.dot_dimension_numbers<[1], [0], [0], [1], [0, 0, 1, 1], [], []>} : vector<64x32xf32>, vector<32x64xf32>, vector<64x64xf32> -> vector<64x64xf32>
    %c0_18 = arith.constant 0 : index
    %c0_19 = arith.constant 0 : index
    %16 = vector.load %arg8[%c0_18, %c0_19] : memref<1x64xf32, #tpu.memory_space<vmem>>, vector<1x64xf32>
    %17 = vector.broadcast %16 : vector<1x64xf32> to vector<64x64xf32>
    %18 = arith.addf %15, %17 : vector<64x64xf32>
    %19 = vector.extract_strided_slice %18 {offsets = [0, 0], sizes = [64, 32], strides = [1, 1]} : vector<64x64xf32> to vector<64x32xf32>
    %20 = vector.extract_strided_slice %18 {offsets = [0, 32], sizes = [64, 32], strides = [1, 1]} : vector<64x64xf32> to vector<64x32xf32>
    %21 = tpu.concatenate %13, %13, %13, %13 in 0 : vector<16x32xf32>, vector<16x32xf32>, vector<16x32xf32>, vector<16x32xf32> -> vector<64x32xf32>
    %22 = arith.mulf %21, %19 : vector<64x32xf32>
    %c0_20 = arith.constant 0 : index
    %c0_21 = arith.constant 0 : index
    %23 = vector.load %arg13[%c0_20, %c0_21] : memref<32x4xf32, #tpu.memory_space<vmem>>, vector<32x4xf32>
    %cst_22 = arith.constant dense<0.000000e+00> : vector<64x4xf32>
    %24 = tpu.matmul %22, %23, %cst_22 {dimension_numbers = #tpu.dot_dimension_numbers<[1], [0], [0], [1], [0, 0, 1, 1], [], []>} : vector<64x32xf32>, vector<32x4xf32>, vector<64x4xf32> -> vector<64x4xf32>
    %cst_23 = arith.constant 0.353553385 : f32
    %25 = vector.broadcast %cst_23 : f32 to vector<64x4xf32>
    %26 = arith.mulf %24, %25 : vector<64x4xf32>
    %27 = vector.extract_strided_slice %26 {offsets = [0, 0], sizes = [16, 4], strides = [1, 1]} : vector<64x4xf32> to vector<16x4xf32>
    %28 = vector.extract_strided_slice %26 {offsets = [16, 0], sizes = [16, 4], strides = [1, 1]} : vector<64x4xf32> to vector<16x4xf32>
    %29 = vector.extract_strided_slice %26 {offsets = [32, 0], sizes = [16, 4], strides = [1, 1]} : vector<64x4xf32> to vector<16x4xf32>
    %30 = vector.extract_strided_slice %26 {offsets = [48, 0], sizes = [16, 4], strides = [1, 1]} : vector<64x4xf32> to vector<16x4xf32>
    %31 = arith.maximumf %27, %28 : vector<16x4xf32>
    %32 = arith.maximumf %31, %29 : vector<16x4xf32>
    %33 = arith.maximumf %32, %30 : vector<16x4xf32>
    %34 = arith.subf %27, %33 : vector<16x4xf32>
    %35 = math.exp %34 : vector<16x4xf32>
    %36 = arith.subf %28, %33 : vector<16x4xf32>
    %37 = math.exp %36 : vector<16x4xf32>
    %38 = arith.subf %29, %33 : vector<16x4xf32>
    %39 = math.exp %38 : vector<16x4xf32>
    %40 = arith.subf %30, %33 : vector<16x4xf32>
    %41 = math.exp %40 : vector<16x4xf32>
    %42 = arith.addf %35, %37 : vector<16x4xf32>
    %43 = arith.addf %42, %39 : vector<16x4xf32>
    %44 = arith.addf %43, %41 : vector<16x4xf32>
    %45 = tpu.reciprocal %44 {approx = true} : vector<16x4xf32> -> vector<16x4xf32>
    %46 = arith.mulf %35, %45 : vector<16x4xf32>
    %47 = arith.mulf %37, %45 : vector<16x4xf32>
    %48 = arith.mulf %39, %45 : vector<16x4xf32>
    %49 = arith.mulf %41, %45 : vector<16x4xf32>
    %50 = tpu.concatenate %46, %47, %48, %49 in 0 : vector<16x4xf32>, vector<16x4xf32>, vector<16x4xf32>, vector<16x4xf32> -> vector<64x4xf32>
    %51 = vector.extract_strided_slice %50 {offsets = [0, 0], sizes = [64, 1], strides = [1, 1]} : vector<64x4xf32> to vector<64x1xf32>
    %52 = vector.shape_cast %51 : vector<64x1xf32> to vector<64x1xf32>
    %53 = vector.broadcast %52 : vector<64x1xf32> to vector<64x8xf32>
    %54 = vector.extract_strided_slice %50 {offsets = [0, 1], sizes = [64, 1], strides = [1, 1]} : vector<64x4xf32> to vector<64x1xf32>
    %55 = vector.shape_cast %54 : vector<64x1xf32> to vector<64x1xf32>
    %56 = vector.broadcast %55 : vector<64x1xf32> to vector<64x8xf32>
    %57 = vector.extract_strided_slice %50 {offsets = [0, 2], sizes = [64, 1], strides = [1, 1]} : vector<64x4xf32> to vector<64x1xf32>
    %58 = vector.shape_cast %57 : vector<64x1xf32> to vector<64x1xf32>
    %59 = vector.broadcast %58 : vector<64x1xf32> to vector<64x8xf32>
    %60 = vector.extract_strided_slice %50 {offsets = [0, 3], sizes = [64, 1], strides = [1, 1]} : vector<64x4xf32> to vector<64x1xf32>
    %61 = vector.shape_cast %60 : vector<64x1xf32> to vector<64x1xf32>
    %62 = vector.broadcast %61 : vector<64x1xf32> to vector<64x8xf32>
    %63 = tpu.concatenate %53, %56, %59, %62 in 1 : vector<64x8xf32>, vector<64x8xf32>, vector<64x8xf32>, vector<64x8xf32> -> vector<64x32xf32>
    %64 = arith.mulf %63, %20 : vector<64x32xf32>
    %65 = vector.extract_strided_slice %64 {offsets = [0, 0], sizes = [16, 32], strides = [1, 1]} : vector<64x32xf32> to vector<16x32xf32>
    %66 = vector.extract_strided_slice %64 {offsets = [16, 0], sizes = [16, 32], strides = [1, 1]} : vector<64x32xf32> to vector<16x32xf32>
    %67 = arith.addf %65, %66 : vector<16x32xf32>
    %68 = vector.extract_strided_slice %64 {offsets = [32, 0], sizes = [16, 32], strides = [1, 1]} : vector<64x32xf32> to vector<16x32xf32>
    %69 = arith.addf %67, %68 : vector<16x32xf32>
    %70 = vector.extract_strided_slice %64 {offsets = [48, 0], sizes = [16, 32], strides = [1, 1]} : vector<64x32xf32> to vector<16x32xf32>
    %71 = arith.addf %69, %70 : vector<16x32xf32>
    %c0_24 = arith.constant 0 : index
    %c0_25 = arith.constant 0 : index
    %72 = vector.load %arg9[%c0_24, %c0_25] : memref<32x32xf32, #tpu.memory_space<vmem>>, vector<32x32xf32>
    %cst_26 = arith.constant dense<0.000000e+00> : vector<16x32xf32>
    %73 = tpu.matmul %71, %72, %cst_26 {dimension_numbers = #tpu.dot_dimension_numbers<[1], [0], [0], [1], [0, 0, 1, 1], [], []>} : vector<16x32xf32>, vector<32x32xf32>, vector<16x32xf32> -> vector<16x32xf32>
    %c0_27 = arith.constant 0 : index
    %c0_28 = arith.constant 0 : index
    %74 = vector.load %arg10[%c0_27, %c0_28] : memref<1x32xf32, #tpu.memory_space<vmem>>, vector<1x32xf32>
    %75 = vector.broadcast %74 : vector<1x32xf32> to vector<16x32xf32>
    %76 = arith.addf %73, %75 : vector<16x32xf32>
    %77 = arith.addf %1, %76 : vector<16x32xf32>
    %c0_29 = arith.constant 0 : index
    %c0_30 = arith.constant 0 : index
    %78 = vector.load %arg11[%c0_29, %c0_30] : memref<1x32xf32, #tpu.memory_space<vmem>>, vector<1x32xf32>
    %c0_31 = arith.constant 0 : index
    %c0_32 = arith.constant 0 : index
    %79 = vector.load %arg12[%c0_31, %c0_32] : memref<1x32xf32, #tpu.memory_space<vmem>>, vector<1x32xf32>
    %cst_33 = arith.constant dense<0.000000e+00> : vector<16xf32>
    %80 = vector.multi_reduction <add>, %77, %cst_33 [1] : vector<16x32xf32> to vector<16xf32>
    %81 = vector.shape_cast %80 : vector<16xf32> to vector<16x1xf32>
    %cst_34 = arith.constant 3.200000e+01 : f32
    %82 = vector.broadcast %cst_34 : f32 to vector<16x1xf32>
    %83 = arith.divf %81, %82 : vector<16x1xf32>
    %84 = vector.broadcast %83 : vector<16x1xf32> to vector<16x32xf32>
    %85 = arith.subf %77, %84 : vector<16x32xf32>
    %86 = arith.mulf %85, %85 : vector<16x32xf32>
    %cst_35 = arith.constant dense<0.000000e+00> : vector<16xf32>
    %87 = vector.multi_reduction <add>, %86, %cst_35 [1] : vector<16x32xf32> to vector<16xf32>
    %88 = vector.shape_cast %87 : vector<16xf32> to vector<16x1xf32>
    %cst_36 = arith.constant 3.200000e+01 : f32
    %89 = vector.broadcast %cst_36 : f32 to vector<16x1xf32>
    %90 = arith.divf %88, %89 : vector<16x1xf32>
    %91 = vector.broadcast %83 : vector<16x1xf32> to vector<16x32xf32>
    %92 = arith.subf %77, %91 : vector<16x32xf32>
    %cst_37 = arith.constant 9.99999974E-6 : f32
    %93 = vector.broadcast %cst_37 : f32 to vector<16x1xf32>
    %94 = arith.addf %90, %93 : vector<16x1xf32>
    %95 = math.rsqrt %94 : vector<16x1xf32>
    %96 = vector.broadcast %95 : vector<16x1xf32> to vector<16x32xf32>
    %97 = arith.mulf %92, %96 : vector<16x32xf32>
    %98 = vector.broadcast %78 : vector<1x32xf32> to vector<16x32xf32>
    %99 = arith.mulf %97, %98 : vector<16x32xf32>
    %100 = vector.broadcast %79 : vector<1x32xf32> to vector<16x32xf32>
    %101 = arith.addf %99, %100 : vector<16x32xf32>
    %c0_38 = arith.constant 0 : index
    %c0_39 = arith.constant 0 : index
    %102 = vector.load %arg14[%c0_38, %c0_39] : memref<32x96xf32, #tpu.memory_space<vmem>>, vector<32x96xf32>
    %cst_40 = arith.constant dense<0.000000e+00> : vector<16x96xf32>
    %103 = tpu.matmul %101, %102, %cst_40 {dimension_numbers = #tpu.dot_dimension_numbers<[1], [0], [0], [1], [0, 0, 1, 1], [], []>} : vector<16x32xf32>, vector<32x96xf32>, vector<16x96xf32> -> vector<16x96xf32>
    %c0_41 = arith.constant 0 : index
    %c0_42 = arith.constant 0 : index
    %104 = vector.load %arg15[%c0_41, %c0_42] : memref<1x96xf32, #tpu.memory_space<vmem>>, vector<1x96xf32>
    %105 = vector.broadcast %104 : vector<1x96xf32> to vector<16x96xf32>
    %106 = arith.addf %103, %105 : vector<16x96xf32>
    %107 = vector.extract_strided_slice %106 {offsets = [0, 0], sizes = [16, 8], strides = [1, 1]} : vector<16x96xf32> to vector<16x8xf32>
    %108 = vector.extract_strided_slice %106 {offsets = [0, 32], sizes = [16, 8], strides = [1, 1]} : vector<16x96xf32> to vector<16x8xf32>
    %109 = vector.extract_strided_slice %106 {offsets = [0, 64], sizes = [16, 8], strides = [1, 1]} : vector<16x96xf32> to vector<16x8xf32>
    %cst_43 = arith.constant dense<0.000000e+00> : vector<16x16xf32>
    %110 = tpu.matmul %107, %108, %cst_43 {dimension_numbers = #tpu.dot_dimension_numbers<[1], [1], [0], [0], [0, 0, 1, 0], [], []>} : vector<16x8xf32>, vector<16x8xf32>, vector<16x16xf32> -> vector<16x16xf32>
    %cst_44 = arith.constant 0.353553385 : f32
    %111 = vector.broadcast %cst_44 : f32 to vector<16x16xf32>
    %112 = arith.mulf %110, %111 : vector<16x16xf32>
    %cst_45 = arith.constant dense<0xFF800000> : vector<16xf32>
    %113 = vector.multi_reduction <maximumf>, %112, %cst_45 [1] : vector<16x16xf32> to vector<16xf32>
    %114 = vector.shape_cast %113 : vector<16xf32> to vector<16x1xf32>
    %115 = vector.broadcast %114 : vector<16x1xf32> to vector<16x16xf32>
    %116 = arith.subf %112, %115 : vector<16x16xf32>
    %117 = math.exp %116 : vector<16x16xf32>
    %cst_46 = arith.constant dense<0.000000e+00> : vector<16xf32>
    %118 = vector.multi_reduction <add>, %117, %cst_46 [1] : vector<16x16xf32> to vector<16xf32>
    %119 = vector.shape_cast %118 : vector<16xf32> to vector<16x1xf32>
    %120 = tpu.reciprocal %119 {approx = true} : vector<16x1xf32> -> vector<16x1xf32>
    %121 = vector.broadcast %120 : vector<16x1xf32> to vector<16x16xf32>
    %122 = arith.mulf %117, %121 : vector<16x16xf32>
    %cst_47 = arith.constant dense<0.000000e+00> : vector<16x8xf32>
    %123 = tpu.matmul %122, %109, %cst_47 {dimension_numbers = #tpu.dot_dimension_numbers<[1], [0], [0], [1], [0, 0, 1, 1], [], []>} : vector<16x16xf32>, vector<16x8xf32>, vector<16x8xf32> -> vector<16x8xf32>
    %c0_48 = arith.constant 0 : index
    %c0_49 = arith.constant 0 : index
    %124 = vector.load %arg16[%c0_48, %c0_49] : memref<32x32xf32, #tpu.memory_space<vmem>>, vector<8x32xf32>
    %cst_50 = arith.constant dense<0.000000e+00> : vector<16x32xf32>
    %125 = tpu.matmul %123, %124, %cst_50 {dimension_numbers = #tpu.dot_dimension_numbers<[1], [0], [0], [1], [0, 0, 1, 1], [], []>} : vector<16x8xf32>, vector<8x32xf32>, vector<16x32xf32> -> vector<16x32xf32>
    %126 = vector.extract_strided_slice %106 {offsets = [0, 8], sizes = [16, 8], strides = [1, 1]} : vector<16x96xf32> to vector<16x8xf32>
    %127 = vector.extract_strided_slice %106 {offsets = [0, 40], sizes = [16, 8], strides = [1, 1]} : vector<16x96xf32> to vector<16x8xf32>
    %128 = vector.extract_strided_slice %106 {offsets = [0, 72], sizes = [16, 8], strides = [1, 1]} : vector<16x96xf32> to vector<16x8xf32>
    %cst_51 = arith.constant dense<0.000000e+00> : vector<16x16xf32>
    %129 = tpu.matmul %126, %127, %cst_51 {dimension_numbers = #tpu.dot_dimension_numbers<[1], [1], [0], [0], [0, 0, 1, 0], [], []>} : vector<16x8xf32>, vector<16x8xf32>, vector<16x16xf32> -> vector<16x16xf32>
    %cst_52 = arith.constant 0.353553385 : f32
    %130 = vector.broadcast %cst_52 : f32 to vector<16x16xf32>
    %131 = arith.mulf %129, %130 : vector<16x16xf32>
    %cst_53 = arith.constant dense<0xFF800000> : vector<16xf32>
    %132 = vector.multi_reduction <maximumf>, %131, %cst_53 [1] : vector<16x16xf32> to vector<16xf32>
    %133 = vector.shape_cast %132 : vector<16xf32> to vector<16x1xf32>
    %134 = vector.broadcast %133 : vector<16x1xf32> to vector<16x16xf32>
    %135 = arith.subf %131, %134 : vector<16x16xf32>
    %136 = math.exp %135 : vector<16x16xf32>
    %cst_54 = arith.constant dense<0.000000e+00> : vector<16xf32>
    %137 = vector.multi_reduction <add>, %136, %cst_54 [1] : vector<16x16xf32> to vector<16xf32>
    %138 = vector.shape_cast %137 : vector<16xf32> to vector<16x1xf32>
    %139 = tpu.reciprocal %138 {approx = true} : vector<16x1xf32> -> vector<16x1xf32>
    %140 = vector.broadcast %139 : vector<16x1xf32> to vector<16x16xf32>
    %141 = arith.mulf %136, %140 : vector<16x16xf32>
    %cst_55 = arith.constant dense<0.000000e+00> : vector<16x8xf32>
    %142 = tpu.matmul %141, %128, %cst_55 {dimension_numbers = #tpu.dot_dimension_numbers<[1], [0], [0], [1], [0, 0, 1, 1], [], []>} : vector<16x16xf32>, vector<16x8xf32>, vector<16x8xf32> -> vector<16x8xf32>
    %c8 = arith.constant 8 : index
    %c0_56 = arith.constant 0 : index
    %143 = vector.load %arg16[%c8, %c0_56] : memref<32x32xf32, #tpu.memory_space<vmem>>, vector<8x32xf32>
    %cst_57 = arith.constant dense<0.000000e+00> : vector<16x32xf32>
    %144 = tpu.matmul %142, %143, %cst_57 {dimension_numbers = #tpu.dot_dimension_numbers<[1], [0], [0], [1], [0, 0, 1, 1], [], []>} : vector<16x8xf32>, vector<8x32xf32>, vector<16x32xf32> -> vector<16x32xf32>
    %145 = arith.addf %125, %144 : vector<16x32xf32>
    %146 = vector.extract_strided_slice %106 {offsets = [0, 16], sizes = [16, 8], strides = [1, 1]} : vector<16x96xf32> to vector<16x8xf32>
    %147 = vector.extract_strided_slice %106 {offsets = [0, 48], sizes = [16, 8], strides = [1, 1]} : vector<16x96xf32> to vector<16x8xf32>
    %148 = vector.extract_strided_slice %106 {offsets = [0, 80], sizes = [16, 8], strides = [1, 1]} : vector<16x96xf32> to vector<16x8xf32>
    %cst_58 = arith.constant dense<0.000000e+00> : vector<16x16xf32>
    %149 = tpu.matmul %146, %147, %cst_58 {dimension_numbers = #tpu.dot_dimension_numbers<[1], [1], [0], [0], [0, 0, 1, 0], [], []>} : vector<16x8xf32>, vector<16x8xf32>, vector<16x16xf32> -> vector<16x16xf32>
    %cst_59 = arith.constant 0.353553385 : f32
    %150 = vector.broadcast %cst_59 : f32 to vector<16x16xf32>
    %151 = arith.mulf %149, %150 : vector<16x16xf32>
    %cst_60 = arith.constant dense<0xFF800000> : vector<16xf32>
    %152 = vector.multi_reduction <maximumf>, %151, %cst_60 [1] : vector<16x16xf32> to vector<16xf32>
    %153 = vector.shape_cast %152 : vector<16xf32> to vector<16x1xf32>
    %154 = vector.broadcast %153 : vector<16x1xf32> to vector<16x16xf32>
    %155 = arith.subf %151, %154 : vector<16x16xf32>
    %156 = math.exp %155 : vector<16x16xf32>
    %cst_61 = arith.constant dense<0.000000e+00> : vector<16xf32>
    %157 = vector.multi_reduction <add>, %156, %cst_61 [1] : vector<16x16xf32> to vector<16xf32>
    %158 = vector.shape_cast %157 : vector<16xf32> to vector<16x1xf32>
    %159 = tpu.reciprocal %158 {approx = true} : vector<16x1xf32> -> vector<16x1xf32>
    %160 = vector.broadcast %159 : vector<16x1xf32> to vector<16x16xf32>
    %161 = arith.mulf %156, %160 : vector<16x16xf32>
    %cst_62 = arith.constant dense<0.000000e+00> : vector<16x8xf32>
    %162 = tpu.matmul %161, %148, %cst_62 {dimension_numbers = #tpu.dot_dimension_numbers<[1], [0], [0], [1], [0, 0, 1, 1], [], []>} : vector<16x16xf32>, vector<16x8xf32>, vector<16x8xf32> -> vector<16x8xf32>
    %c16 = arith.constant 16 : index
    %c0_63 = arith.constant 0 : index
    %163 = vector.load %arg16[%c16, %c0_63] : memref<32x32xf32, #tpu.memory_space<vmem>>, vector<8x32xf32>
    %cst_64 = arith.constant dense<0.000000e+00> : vector<16x32xf32>
    %164 = tpu.matmul %162, %163, %cst_64 {dimension_numbers = #tpu.dot_dimension_numbers<[1], [0], [0], [1], [0, 0, 1, 1], [], []>} : vector<16x8xf32>, vector<8x32xf32>, vector<16x32xf32> -> vector<16x32xf32>
    %165 = arith.addf %145, %164 : vector<16x32xf32>
    %166 = vector.extract_strided_slice %106 {offsets = [0, 24], sizes = [16, 8], strides = [1, 1]} : vector<16x96xf32> to vector<16x8xf32>
    %167 = vector.extract_strided_slice %106 {offsets = [0, 56], sizes = [16, 8], strides = [1, 1]} : vector<16x96xf32> to vector<16x8xf32>
    %168 = vector.extract_strided_slice %106 {offsets = [0, 88], sizes = [16, 8], strides = [1, 1]} : vector<16x96xf32> to vector<16x8xf32>
    %cst_65 = arith.constant dense<0.000000e+00> : vector<16x16xf32>
    %169 = tpu.matmul %166, %167, %cst_65 {dimension_numbers = #tpu.dot_dimension_numbers<[1], [1], [0], [0], [0, 0, 1, 0], [], []>} : vector<16x8xf32>, vector<16x8xf32>, vector<16x16xf32> -> vector<16x16xf32>
    %cst_66 = arith.constant 0.353553385 : f32
    %170 = vector.broadcast %cst_66 : f32 to vector<16x16xf32>
    %171 = arith.mulf %169, %170 : vector<16x16xf32>
    %cst_67 = arith.constant dense<0xFF800000> : vector<16xf32>
    %172 = vector.multi_reduction <maximumf>, %171, %cst_67 [1] : vector<16x16xf32> to vector<16xf32>
    %173 = vector.shape_cast %172 : vector<16xf32> to vector<16x1xf32>
    %174 = vector.broadcast %173 : vector<16x1xf32> to vector<16x16xf32>
    %175 = arith.subf %171, %174 : vector<16x16xf32>
    %176 = math.exp %175 : vector<16x16xf32>
    %cst_68 = arith.constant dense<0.000000e+00> : vector<16xf32>
    %177 = vector.multi_reduction <add>, %176, %cst_68 [1] : vector<16x16xf32> to vector<16xf32>
    %178 = vector.shape_cast %177 : vector<16xf32> to vector<16x1xf32>
    %179 = tpu.reciprocal %178 {approx = true} : vector<16x1xf32> -> vector<16x1xf32>
    %180 = vector.broadcast %179 : vector<16x1xf32> to vector<16x16xf32>
    %181 = arith.mulf %176, %180 : vector<16x16xf32>
    %cst_69 = arith.constant dense<0.000000e+00> : vector<16x8xf32>
    %182 = tpu.matmul %181, %168, %cst_69 {dimension_numbers = #tpu.dot_dimension_numbers<[1], [0], [0], [1], [0, 0, 1, 1], [], []>} : vector<16x16xf32>, vector<16x8xf32>, vector<16x8xf32> -> vector<16x8xf32>
    %c24 = arith.constant 24 : index
    %c0_70 = arith.constant 0 : index
    %183 = vector.load %arg16[%c24, %c0_70] : memref<32x32xf32, #tpu.memory_space<vmem>>, vector<8x32xf32>
    %cst_71 = arith.constant dense<0.000000e+00> : vector<16x32xf32>
    %184 = tpu.matmul %182, %183, %cst_71 {dimension_numbers = #tpu.dot_dimension_numbers<[1], [0], [0], [1], [0, 0, 1, 1], [], []>} : vector<16x8xf32>, vector<8x32xf32>, vector<16x32xf32> -> vector<16x32xf32>
    %185 = arith.addf %165, %184 : vector<16x32xf32>
    %c0_72 = arith.constant 0 : index
    %c0_73 = arith.constant 0 : index
    %186 = vector.load %arg17[%c0_72, %c0_73] : memref<1x32xf32, #tpu.memory_space<vmem>>, vector<1x32xf32>
    %187 = vector.broadcast %186 : vector<1x32xf32> to vector<16x32xf32>
    %188 = arith.addf %185, %187 : vector<16x32xf32>
    %189 = arith.addf %101, %188 : vector<16x32xf32>
    %c0_74 = arith.constant 0 : index
    %c0_75 = arith.constant 0 : index
    %190 = vector.load %arg18[%c0_74, %c0_75] : memref<1x32xf32, #tpu.memory_space<vmem>>, vector<1x32xf32>
    %c0_76 = arith.constant 0 : index
    %c0_77 = arith.constant 0 : index
    %191 = vector.load %arg19[%c0_76, %c0_77] : memref<1x32xf32, #tpu.memory_space<vmem>>, vector<1x32xf32>
    %cst_78 = arith.constant dense<0.000000e+00> : vector<16xf32>
    %192 = vector.multi_reduction <add>, %189, %cst_78 [1] : vector<16x32xf32> to vector<16xf32>
    %193 = vector.shape_cast %192 : vector<16xf32> to vector<16x1xf32>
    %cst_79 = arith.constant 3.200000e+01 : f32
    %194 = vector.broadcast %cst_79 : f32 to vector<16x1xf32>
    %195 = arith.divf %193, %194 : vector<16x1xf32>
    %196 = vector.broadcast %195 : vector<16x1xf32> to vector<16x32xf32>
    %197 = arith.subf %189, %196 : vector<16x32xf32>
    %198 = arith.mulf %197, %197 : vector<16x32xf32>
    %cst_80 = arith.constant dense<0.000000e+00> : vector<16xf32>
    %199 = vector.multi_reduction <add>, %198, %cst_80 [1] : vector<16x32xf32> to vector<16xf32>
    %200 = vector.shape_cast %199 : vector<16xf32> to vector<16x1xf32>
    %cst_81 = arith.constant 3.200000e+01 : f32
    %201 = vector.broadcast %cst_81 : f32 to vector<16x1xf32>
    %202 = arith.divf %200, %201 : vector<16x1xf32>
    %203 = vector.broadcast %195 : vector<16x1xf32> to vector<16x32xf32>
    %204 = arith.subf %189, %203 : vector<16x32xf32>
    %cst_82 = arith.constant 9.99999974E-6 : f32
    %205 = vector.broadcast %cst_82 : f32 to vector<16x1xf32>
    %206 = arith.addf %202, %205 : vector<16x1xf32>
    %207 = math.rsqrt %206 : vector<16x1xf32>
    %208 = vector.broadcast %207 : vector<16x1xf32> to vector<16x32xf32>
    %209 = arith.mulf %204, %208 : vector<16x32xf32>
    %210 = vector.broadcast %190 : vector<1x32xf32> to vector<16x32xf32>
    %211 = arith.mulf %209, %210 : vector<16x32xf32>
    %212 = vector.broadcast %191 : vector<1x32xf32> to vector<16x32xf32>
    %213 = arith.addf %211, %212 : vector<16x32xf32>
    %c0_83 = arith.constant 0 : index
    %c0_84 = arith.constant 0 : index
    %214 = vector.load %arg20[%c0_83, %c0_84] : memref<32x128xf32, #tpu.memory_space<vmem>>, vector<32x128xf32>
    %cst_85 = arith.constant dense<0.000000e+00> : vector<16x128xf32>
    %215 = tpu.matmul %213, %214, %cst_85 {dimension_numbers = #tpu.dot_dimension_numbers<[1], [0], [0], [1], [0, 0, 1, 1], [], []>} : vector<16x32xf32>, vector<32x128xf32>, vector<16x128xf32> -> vector<16x128xf32>
    %c0_86 = arith.constant 0 : index
    %c0_87 = arith.constant 0 : index
    %216 = vector.load %arg21[%c0_86, %c0_87] : memref<1x128xf32, #tpu.memory_space<vmem>>, vector<1x128xf32>
    %217 = vector.broadcast %216 : vector<1x128xf32> to vector<16x128xf32>
    %218 = arith.addf %215, %217 : vector<16x128xf32>
    %cst_88 = arith.constant 0.000000e+00 : f32
    %219 = vector.broadcast %cst_88 : f32 to vector<16x128xf32>
    %220 = arith.maximumf %218, %219 : vector<16x128xf32>
    %c0_89 = arith.constant 0 : index
    %c0_90 = arith.constant 0 : index
    %221 = vector.load %arg22[%c0_89, %c0_90] : memref<128x32xf32, #tpu.memory_space<vmem>>, vector<128x32xf32>
    %cst_91 = arith.constant dense<0.000000e+00> : vector<16x32xf32>
    %222 = tpu.matmul %220, %221, %cst_91 {dimension_numbers = #tpu.dot_dimension_numbers<[1], [0], [0], [1], [0, 0, 1, 1], [], []>} : vector<16x128xf32>, vector<128x32xf32>, vector<16x32xf32> -> vector<16x32xf32>
    %c0_92 = arith.constant 0 : index
    %c0_93 = arith.constant 0 : index
    %223 = vector.load %arg23[%c0_92, %c0_93] : memref<1x32xf32, #tpu.memory_space<vmem>>, vector<1x32xf32>
    %224 = vector.broadcast %223 : vector<1x32xf32> to vector<16x32xf32>
    %225 = arith.addf %222, %224 : vector<16x32xf32>
    %226 = arith.addf %213, %225 : vector<16x32xf32>
    %c0_94 = arith.constant 0 : index
    %c0_95 = arith.constant 0 : index
    %227 = vector.load %arg24[%c0_94, %c0_95] : memref<1x32xf32, #tpu.memory_space<vmem>>, vector<1x32xf32>
    %c0_96 = arith.constant 0 : index
    %c0_97 = arith.constant 0 : index
    %228 = vector.load %arg25[%c0_96, %c0_97] : memref<1x32xf32, #tpu.memory_space<vmem>>, vector<1x32xf32>
    %cst_98 = arith.constant dense<0.000000e+00> : vector<16xf32>
    %229 = vector.multi_reduction <add>, %226, %cst_98 [1] : vector<16x32xf32> to vector<16xf32>
    %230 = vector.shape_cast %229 : vector<16xf32> to vector<16x1xf32>
    %cst_99 = arith.constant 3.200000e+01 : f32
    %231 = vector.broadcast %cst_99 : f32 to vector<16x1xf32>
    %232 = arith.divf %230, %231 : vector<16x1xf32>
    %233 = vector.broadcast %232 : vector<16x1xf32> to vector<16x32xf32>
    %234 = arith.subf %226, %233 : vector<16x32xf32>
    %235 = arith.mulf %234, %234 : vector<16x32xf32>
    %cst_100 = arith.constant dense<0.000000e+00> : vector<16xf32>
    %236 = vector.multi_reduction <add>, %235, %cst_100 [1] : vector<16x32xf32> to vector<16xf32>
    %237 = vector.shape_cast %236 : vector<16xf32> to vector<16x1xf32>
    %cst_101 = arith.constant 3.200000e+01 : f32
    %238 = vector.broadcast %cst_101 : f32 to vector<16x1xf32>
    %239 = arith.divf %237, %238 : vector<16x1xf32>
    %240 = vector.broadcast %232 : vector<16x1xf32> to vector<16x32xf32>
    %241 = arith.subf %226, %240 : vector<16x32xf32>
    %cst_102 = arith.constant 9.99999974E-6 : f32
    %242 = vector.broadcast %cst_102 : f32 to vector<16x1xf32>
    %243 = arith.addf %239, %242 : vector<16x1xf32>
    %244 = math.rsqrt %243 : vector<16x1xf32>
    %245 = vector.broadcast %244 : vector<16x1xf32> to vector<16x32xf32>
    %246 = arith.mulf %241, %245 : vector<16x32xf32>
    %247 = vector.broadcast %227 : vector<1x32xf32> to vector<16x32xf32>
    %248 = arith.mulf %246, %247 : vector<16x32xf32>
    %249 = vector.broadcast %228 : vector<1x32xf32> to vector<16x32xf32>
    %250 = arith.addf %248, %249 : vector<16x32xf32>
    %c0_103 = arith.constant 0 : index
    %c0_104 = arith.constant 0 : index
    %c0_105 = arith.constant 0 : index
    %251 = vector.load %arg26[%c0_103, %c0_104, %c0_105] : memref<1x16x32xf32, #tpu.memory_space<vmem>>, vector<1x16x32xf32>
    %252 = vector.shape_cast %251 : vector<1x16x32xf32> to vector<16x32xf32>
    %253 = vector.shape_cast %250 : vector<16x32xf32> to vector<1x16x32xf32>
    tpu.vector_store %arg26[%c0_103, %c0_104, %c0_105], %253 {strides = array<i32>} : memref<1x16x32xf32, #tpu.memory_space<vmem>>, vector<1x16x32xf32>,
    return
  }
  func.func @transform_0(%arg0: i32) -> (i32, i32, i32) {
    %c0_i32 = arith.constant 0 : i32
    %c0_i32_0 = arith.constant 0 : i32
    %c0_i32_1 = arith.constant 0 : i32
    return %arg0, %c0_i32, %c0_i32_0 : i32, i32, i32
  }
  func.func @transform_1(%arg0: i32) -> (i32, i32, i32) {
    %c0_i32 = arith.constant 0 : i32
    %c0_i32_0 = arith.constant 0 : i32
    %c0_i32_1 = arith.constant 0 : i32
    return %arg0, %c0_i32, %c0_i32_0 : i32, i32, i32
  }
  func.func @transform_2(%arg0: i32) -> (i32, i32, i32) {
    %c0_i32 = arith.constant 0 : i32
    %c0_i32_0 = arith.constant 0 : i32
    %c0_i32_1 = arith.constant 0 : i32
    return %arg0, %c0_i32, %c0_i32_0 : i32, i32, i32
  }
  func.func @transform_3(%arg0: i32) -> (i32, i32, i32) {
    %c0_i32 = arith.constant 0 : i32
    %c0_i32_0 = arith.constant 0 : i32
    %c0_i32_1 = arith.constant 0 : i32
    return %arg0, %c0_i32, %c0_i32_0 : i32, i32, i32
  }
  func.func @transform_4(%arg0: i32) -> (i32, i32) {
    %c0_i32 = arith.constant 0 : i32
    %c0_i32_0 = arith.constant 0 : i32
    %c0_i32_1 = arith.constant 0 : i32
    return %c0_i32, %c0_i32_0 : i32, i32
  }
  func.func @transform_5(%arg0: i32) -> (i32, i32) {
    %c0_i32 = arith.constant 0 : i32
    %c0_i32_0 = arith.constant 0 : i32
    %c0_i32_1 = arith.constant 0 : i32
    return %c0_i32, %c0_i32_0 : i32, i32
  }
  func.func @transform_6(%arg0: i32) -> (i32, i32) {
    %c0_i32 = arith.constant 0 : i32
    %c0_i32_0 = arith.constant 0 : i32
    %c0_i32_1 = arith.constant 0 : i32
    return %c0_i32, %c0_i32_0 : i32, i32
  }
  func.func @transform_7(%arg0: i32) -> (i32, i32) {
    %c0_i32 = arith.constant 0 : i32
    %c0_i32_0 = arith.constant 0 : i32
    %c0_i32_1 = arith.constant 0 : i32
    return %c0_i32, %c0_i32_0 : i32, i32
  }
  func.func @transform_8(%arg0: i32) -> (i32, i32) {
    %c0_i32 = arith.constant 0 : i32
    %c0_i32_0 = arith.constant 0 : i32
    %c0_i32_1 = arith.constant 0 : i32
    return %c0_i32, %c0_i32_0 : i32, i32
  }
  func.func @transform_9(%arg0: i32) -> (i32, i32) {
    %c0_i32 = arith.constant 0 : i32
    %c0_i32_0 = arith.constant 0 : i32
    %c0_i32_1 = arith.constant 0 : i32
    return %c0_i32, %c0_i32_0 : i32, i32
  }
  func.func @transform_10(%arg0: i32) -> (i32, i32) {
    %c0_i32 = arith.constant 0 : i32
    %c0_i32_0 = arith.constant 0 : i32
    %c0_i32_1 = arith.constant 0 : i32
    return %c0_i32, %c0_i32_0 : i32, i32
  }
  func.func @transform_11(%arg0: i32) -> (i32, i32) {
    %c0_i32 = arith.constant 0 : i32
    %c0_i32_0 = arith.constant 0 : i32
    %c0_i32_1 = arith.constant 0 : i32
    return %c0_i32, %c0_i32_0 : i32, i32
  }
  func.func @transform_12(%arg0: i32) -> (i32, i32) {
    %c0_i32 = arith.constant 0 : i32
    %c0_i32_0 = arith.constant 0 : i32
    %c0_i32_1 = arith.constant 0 : i32
    return %c0_i32, %c0_i32_0 : i32, i32
  }
  func.func @transform_13(%arg0: i32) -> (i32, i32) {
    %c0_i32 = arith.constant 0 : i32
    %c0_i32_0 = arith.constant 0 : i32
    %c0_i32_1 = arith.constant 0 : i32
    return %c0_i32, %c0_i32_0 : i32, i32
  }
  func.func @transform_14(%arg0: i32) -> (i32, i32) {
    %c0_i32 = arith.constant 0 : i32
    %c0_i32_0 = arith.constant 0 : i32
    %c0_i32_1 = arith.constant 0 : i32
    return %c0_i32, %c0_i32_0 : i32, i32
  }
  func.func @transform_15(%arg0: i32) -> (i32, i32) {
    %c0_i32 = arith.constant 0 : i32
    %c0_i32_0 = arith.constant 0 : i32
    %c0_i32_1 = arith.constant 0 : i32
    return %c0_i32, %c0_i32_0 : i32, i32
  }
  func.func @transform_16(%arg0: i32) -> (i32, i32) {
    %c0_i32 = arith.constant 0 : i32
    %c0_i32_0 = arith.constant 0 : i32
    %c0_i32_1 = arith.constant 0 : i32
    return %c0_i32, %c0_i32_0 : i32, i32
  }
  func.func @transform_17(%arg0: i32) -> (i32, i32) {
    %c0_i32 = arith.constant 0 : i32
    %c0_i32_0 = arith.constant 0 : i32
    %c0_i32_1 = arith.constant 0 : i32
    return %c0_i32, %c0_i32_0 : i32, i32
  }
  func.func @transform_18(%arg0: i32) -> (i32, i32) {
    %c0_i32 = arith.constant 0 : i32
    %c0_i32_0 = arith.constant 0 : i32
    %c0_i32_1 = arith.constant 0 : i32
    return %c0_i32, %c0_i32_0 : i32, i32
  }
  func.func @transform_19(%arg0: i32) -> (i32, i32) {
    %c0_i32 = arith.constant 0 : i32
    %c0_i32_0 = arith.constant 0 : i32
    %c0_i32_1 = arith.constant 0 : i32
    return %c0_i32, %c0_i32_0 : i32, i32
  }
  func.func @transform_20(%arg0: i32) -> (i32, i32) {
    %c0_i32 = arith.constant 0 : i32
    %c0_i32_0 = arith.constant 0 : i32
    %c0_i32_1 = arith.constant 0 : i32
    return %c0_i32, %c0_i32_0 : i32, i32
  }
  func.func @transform_21(%arg0: i32) -> (i32, i32) {
    %c0_i32 = arith.constant 0 : i32
    %c0_i32_0 = arith.constant 0 : i32
    %c0_i32_1 = arith.constant 0 : i32
    return %c0_i32, %c0_i32_0 : i32, i32
  }
  func.func @transform_22(%arg0: i32) -> (i32, i32) {
    %c0_i32 = arith.constant 0 : i32
    %c0_i32_0 = arith.constant 0 : i32
    %c0_i32_1 = arith.constant 0 : i32
    return %c0_i32, %c0_i32_0 : i32, i32
  }
  func.func @transform_23(%arg0: i32) -> (i32, i32) {
    %c0_i32 = arith.constant 0 : i32
    %c0_i32_0 = arith.constant 0 : i32
    %c0_i32_1 = arith.constant 0 : i32
    return %c0_i32, %c0_i32_0 : i32, i32
  }
  func.func @transform_24(%arg0: i32) -> (i32, i32) {
    %c0_i32 = arith.constant 0 : i32
    %c0_i32_0 = arith.constant 0 : i32
    %c0_i32_1 = arith.constant 0 : i32
    return %c0_i32, %c0_i32_0 : i32, i32
  }
  func.func @transform_25(%arg0: i32) -> (i32, i32, i32) {
    %c0_i32 = arith.constant 0 : i32
    %c0_i32_0 = arith.constant 0 : i32
    %c0_i32_1 = arith.constant 0 : i32
    return %arg0, %c0_i32, %c0_i32_0 : i32, i32, i32
  }
}

</mosaic_0001>

<bundles_post_ra>
// kernel: tpu_custom_call.1
= control target key start
LH: loop header
LB: loop body
LE: loop exit
PB: predicated region body
PF: predicated region fallthrough
CT: control target
= control target key end

     0   :  { %s5536_s0 = inlined_call_operand.vmem [shape: f32[2,16,32], index: 0, kind: input, shape index: {}]   ;;  %s5537_s1 = inlined_call_operand.vmem [shape: f32[2,16,32], index: 1, kind: input, shape index: {}]   ;;  %s5538_s2 = inlined_call_operand.vmem [shape: f32[2,16,32], index: 2, kind: input, shape index: {}]   ;;  %s5539_s3 = inlined_call_operand.vmem [shape: f32[2,16,32], index: 3, kind: input, shape index: {}]   ;;  %s5540_s4 = inlined_call_operand.vmem [shape: f32[32,32], index: 4, kind: input, shape index: {}]   ;;  %s5541_s5 = inlined_call_operand.hbm [shape: f32[1,32], index: 5, kind: input, shape index: {}]   ;;  %s5542_s6 = inlined_call_operand.hbm [shape: f32[32,64], index: 6, kind: input, shape index: {}]   ;;  %s5543_s7 = inlined_call_operand.hbm [shape: f32[1,64], index: 7, kind: input, shape index: {}]   ;;  %s5544_s8 = inlined_call_operand.vmem [shape: f32[32,32], index: 8, kind: input, shape index: {}]   ;;  %s5545_s9 = inlined_call_operand.hbm [shape: f32[1,32], index: 9, kind: input, shape index: {}]   ;;  %s5546_s10 = inlined_call_operand.hbm [shape: f32[1,32], index: 10, kind: input, shape index: {}]   ;;  %s5547_s11 = inlined_call_operand.hbm [shape: f32[1,32], index: 11, kind: input, shape index: {}]   ;;  %s5548_s12 = inlined_call_operand.vmem [shape: f32[32,4], index: 12, kind: input, shape index: {}]   ;;  %s5549_s13 = inlined_call_operand.hbm [shape: f32[32,96], index: 13, kind: input, shape index: {}]   ;;  %s5550_s14 = inlined_call_operand.hbm [shape: f32[1,96], index: 14, kind: input, shape index: {}]   ;;  %s5551_s15 = inlined_call_operand.hbm [shape: f32[32,32], index: 15, kind: input, shape index: {}]   ;;  %s5552_s16 = inlined_call_operand.hbm [shape: f32[1,32], index: 16, kind: input, shape index: {}]   ;;  %s5553_s17 = inlined_call_operand.vmem [shape: f32[1,32], index: 17, kind: input, shape index: {}]   ;;  %s5554_s18 = inlined_call_operand.vmem [shape: f32[1,32], index: 18, kind: input, shape index: {}]   ;;  %s5555_s19 = inlined_call_operand.vmem [shape: f32[32,128], index: 19, kind: input, shape index: {}]   ;;  %s5556_s20 = inlined_call_operand.vmem [shape: f32[1,128], index: 20, kind: input, shape index: {}]   ;;  %s5557_s21 = inlined_call_operand.vmem [shape: f32[128,32], index: 21, kind: input, shape index: {}]   ;;  %s5558_s22 = inlined_call_operand.vmem [shape: f32[1,32], index: 22, kind: input, shape index: {}]   ;;  %s5559_s23 = inlined_call_operand.vmem [shape: f32[1,32], index: 23, kind: input, shape index: {}]   ;;  %s5560_s24 = inlined_call_operand.vmem [shape: f32[1,32], index: 24, kind: input, shape index: {}]   ;;  %s5561_s25 = inlined_call_operand.hbm [shape: f32[2,16,32], index: 25, kind: output, shape index: {}]  }
   0x1   :  { %5586 = sst [smem:[#allocation35_spill]] %s5536_s0 }
   0x2   :  { %5587 = sst [smem:[#allocation36_spill]] %s5537_s1 }
   0x3   :  { %5588 = sst [smem:[#allocation37_spill]] %s5538_s2 }
   0x4   :  { %5589 = sst [smem:[#allocation38_spill]] %s5539_s3 }
   0x5   :  { %5590 = sst [smem:[#allocation39_spill]] %s5540_s4 }
   0x6   :  { %5591 = sst [smem:[#allocation40_spill]] %s5541_s5 }
   0x7   :  { %5592 = sst [smem:[#allocation41_spill]] %s5542_s6 }
   0x8   :  { %5593 = sst [smem:[#allocation42_spill]] %s5543_s7 }
   0x9   :  { %5594 = sst [smem:[#allocation43_spill]] %s5544_s8 }
   0xa   :  { %5595 = sst [smem:[#allocation44_spill]] %s5545_s9 }
   0xb   :  { %5596 = sst [smem:[#allocation45_spill]] %s5547_s11 }
   0xc   :  { %5597 = sst [smem:[#allocation46_spill]] %s5556_s20 }
   0xd   :  { %5598 = sst [smem:[#allocation47_spill]] %s5558_s22 }
   0xe   :  { %5599 = sst [smem:[#allocation48_spill]] %s5559_s23 }
   0xf   :  { %5600 = sst [smem:[#allocation49_spill]] %s5560_s24 }
  0x10   :  { %5601 = sst [smem:[#allocation50_spill]] %s5561_s25 }
  0x11   :  { %30 = vsyncpa [#allocation3], 0 }
  0x12   :  { %31 = vsyncpa [#allocation6], 0 }
  0x13   :  { %32 = vsyncpa [#allocation9], 0 }
  0x14   :  { %33 = vsyncpa [#allocation12], 0 }
  0x15   :  { %34 = vsyncpa [#allocation15], 0 }
  0x16   :  { %35 = vsyncpa [#allocation18], 0 }
  0x17   :  { %36 = vsyncpa [#allocation4], 0 }
  0x18   :  { %38 = vsyncpa [#allocation4 + $0x1], 0  ;;  %s4831_s29 = smov 0   ;;  %s4833_s2 = smov 0  }
  0x19   :  { %5602 = sst [smem:[#allocation27_spill]] %s4831_s29  ;;  %s4835_s6 = smov 0  }
  0x1a   :  { %s4837_s30 = smov 0  }
  0x1b LB: > { %s5604_s29 = sld [smem:[#allocation27_spill]]  ;;  %5606 = sst [smem:[#allocation28_spill]] %s4661_s2  ;;  %s4669_s30 = sphi %s4837_s30, %s5660_s30   ;;  %s4665_s6 = sphi %s4835_s6, %s5665_s6   ;;  %s4661_s2 = sphi %s4833_s2, %s5662_s2  }
  0x1c   : > { %5607 = sst [smem:[#allocation29_spill]] %s4665_s6  ;;  %s4852_s7 = sadd.s32 4294967295, %s4669_s30  }
  0x1d   : > { %5608 = sst [smem:[#allocation30_spill]] %s4669_s30  ;;  %s3468_s3 = sadd.s32 4294967294, %s4669_s30  }
  0x1e   : > { %s4856_s26 = sadd.s32 1, %s4669_s30   ;;  %s596_s1 = sadd.s32 1, %s4665_s6 }
  0x1f   : > { %5609 = sst [smem:[#allocation31_spill]] %s4856_s26  ;;  %s593_s8 = ssub.s32 %s4669_s30, %s4856_s26 }
  0x20   : > { %p606_p0 = scmp.ne.s32.totalorder %s4665_s6, %s4661_s2  ;;  %p594_p1 = scmp.eq.s32.totalorder %s593_s8, 0 }
  0x21   : > { %5605 = sst [smem:[#allocation27_spill]] %s5604_s29  ;;  %p607_p2 = scmp.eq.s32.totalorder %s4852_s7, 1 }
  0x22   : > { %p612_p3 = scmp.ne.s32.totalorder %s4661_s2, %s5604_s29  ;;  %p613_p4 = scmp.eq.s32.totalorder %s3468_s3, 1 }
  0x23   : > { %s4867_s27 = scalar_select %p594_p1, %s4665_s6, %s596_s1  }
  0x24   : > { %p4869_p5 = por %p607_p2, %p606_p0  ;;  %p4873_p6 = por %p613_p4, %p612_p3 }
  0x25   : > { %5610 = sst [smem:[#allocation32_spill]] %s4867_s27  ;;  %p3469_p7 = scmp.ge.s32.totalorder %s4669_s30, 1 }
  0x26   : > { %s5611_s4 = scalar_select %p4869_p5, 1, 0 }
  0x27   : > { %s5613_s28 = scalar_select %p4873_p6, 1, 0 }
  0x28   : > { %5612 = sst [smem:[#allocation33_spill]] %s5611_s4  ;;  %p620_p8 = scmp.lt.s32.totalorder %s4669_s30, 3 }
  0x29   : > { %5614 = sst [smem:[#allocation34_spill]] %s5613_s28  ;;  %p5577_p9 = scmp.eq.s32.totalorder %s4852_s7, 0 }
  0x2a   : > { %p4880_p10 = pnand %p3469_p7, %p620_p8  ;;  %s4671_s5 = smov [#allocation5]  }
  0x2b   : > { %s646_s0 = sshll.u32 %s4671_s5, 4  ;;  %s4672_s1 = smov [#allocation8]   ;;  %s4886_s0 = int_to_ptr.vmem [resolvable:$true] %s646_s0 }
  0x2c   : > { %s5615_s9 = scalar_select %p4880_p10, 1, 0 }
  0x2d   : > { %p4053_p11 = pneg %p4880_p10  ;;  %s674_s8 = sshll.u32 %s4672_s1, 4  ;;  %s4894_s8 = int_to_ptr.vmem [resolvable:$true] %s674_s8 }
  0x2e   : > { %s4673_s27 = smov [#allocation11]   ;;  %s5617_s5 = sld [smem:[#allocation41_spill]] }
  0x2f   : > { %p4890_p12 = pnand %p5577_p9, %p4053_p11  ;;  %s4896_s6 = sshll.u32 %s4673_s27, 4  ;;  %s697_s6 = int_to_ptr.vmem [resolvable:$true] %s4896_s6 }
  0x31   : > { %p4906_p0 = pneg %p4890_p12 }
  0x34   : > { %s4303_s29 = scalar_lea.hbm %s5617_s5, 512 }
  0x35   : > { %p4304_p13 = scmp.ne.s32.totalorder %s5617_s5, %s4303_s29  ;;  %p4310_p3 = scmp.lt.u32.totalorder %s4303_s29, %s5617_s5 }
  0x37   : > { %p4306_p1 = pnand %p4906_p0, %p4304_p13 }
  0x39   : > { %p4307_p2 = pneg %p4306_p1 }
  0x3b   : > { %p4312_p4 = pnand %p4310_p3, %p4307_p2 }
  0x3d   : > { %4315 = shalt.err (!%p4312_p4)
}
  0x3e   : > { %s4316_s25 = scalar_lea.vmem %s4886_s0, 512  ;;  %p4324_p9 = scmp.lt.s32.totalorder %s4886_s0, %s4886_s0 }
  0x3f   : > { %p4317_p7 = scmp.ne.s32.totalorder %s4886_s0, %s4316_s25  ;;  %p4325_p6 = scmp.lt.s32.totalorder %s4316_s25, %s4316_s25 }
  0x41   : > { %p4319_p8 = pnand %p4317_p7, %p4906_p0  ;;  %p4326_p13 = por %p4325_p6, %p4324_p9 }
  0x43   : > { %p4320_p11 = pneg %p4319_p8 }
  0x45   : > { %p4327_p1 = pnand %p4326_p13, %p4320_p11 }
  0x47   : > { %4330 = shalt.err (!%p4327_p1)
}
  0x48   : > { %s5581_s30 = smov 128   ;;  %s5583_s29 = smov 8  }
  0x49   : > { %4059 = dma.hbm_to_vmem [thread:$0]  (!%p4890_p12), %s5617_s5, 512, %s4886_s0, [#allocation6], %s5581_s30, %s5581_s30, %s5583_s29  }
  0x4a   : > { %s5619_s24 = sld [smem:[#allocation44_spill]] }
  0x50   : > { %s4331_s25 = scalar_lea.hbm %s5619_s24, 16 }
  0x51   : > { %p4332_p6 = scmp.ne.s32.totalorder %s5619_s24, %s4331_s25  ;;  %p4338_p3 = scmp.lt.u32.totalorder %s4331_s25, %s5619_s24 }
  0x53   : > { %p4334_p9 = pnand %p4332_p6, %p4906_p0 }
  0x55   : > { %p4335_p2 = pneg %p4334_p9 }
  0x57   : > { %p4340_p4 = pnand %p4338_p3, %p4335_p2 }
  0x59   : > { %4343 = shalt.err (!%p4340_p4)
}
  0x5a   : > { %s4344_s0 = scalar_lea.vmem %s4894_s8, 16  ;;  %s4351_s23 = scalar_lea.vmem %s4894_s8, 32 }
  0x5b   : > { %p4345_p7 = scmp.ne.s32.totalorder %s4894_s8, %s4344_s0  ;;  %p4352_p13 = scmp.lt.s32.totalorder %s4894_s8, %s4894_s8 }
  0x5c   : > { %p4353_p1 = scmp.lt.s32.totalorder %s4351_s23, %s4344_s0 }
  0x5d   : > { %p4347_p8 = pnand %p4345_p7, %p4906_p0 }
  0x5e   : > { %p4354_p6 = por %p4353_p1, %p4352_p13 }
  0x5f   : > { %p4348_p11 = pneg %p4347_p8 }
  0x61   : > { %p4355_p9 = pnand %p4354_p6, %p4348_p11 }
  0x63   : > { %4358 = shalt.err (!%p4355_p9)
}
  0x64   : > { %4065 = dma.hbm_to_vmem [thread:$0]  (!%p4890_p12), %s5619_s24, 16, %s4894_s8, [#allocation9]  }
  0x65   : > { %s5620_s11 = sld [smem:[#allocation45_spill]] }
  0x6b   : > { %s4359_s28 = scalar_lea.hbm %s5620_s11, 16 }
  0x6c   : > { %p4360_p2 = scmp.ne.s32.totalorder %s5620_s11, %s4359_s28  ;;  %p4366_p7 = scmp.lt.u32.totalorder %s4359_s28, %s5620_s11 }
  0x6e   : > { %p4362_p3 = pnand %p4360_p2, %p4906_p0 }
  0x70   : > { %p4363_p4 = pneg %p4362_p3 }
  0x72   : > { %p4368_p8 = pnand %p4366_p7, %p4363_p4 }
  0x74   : > { %4371 = shalt.err (!%p4368_p8)
}
  0x75   : > { %s4372_s23 = scalar_lea.vmem %s697_s6, 16  ;;  %s4379_s8 = scalar_lea.vmem %s697_s6, 32 }
  0x76   : > { %p4373_p11 = scmp.ne.s32.totalorder %s697_s6, %s4372_s23  ;;  %p4380_p6 = scmp.lt.s32.totalorder %s697_s6, %s697_s6 }
  0x77   : > { %p4381_p9 = scmp.lt.s32.totalorder %s4379_s8, %s4372_s23 }
  0x78   : > { %p4375_p13 = pnand %p4373_p11, %p4906_p0 }
  0x79   : > { %p4382_p5 = por %p4381_p9, %p4380_p6 }
  0x7a   : > { %p4376_p1 = pneg %p4375_p13 }
  0x7c   : > { %p4383_p10 = pnand %p4382_p5, %p4376_p1 }
  0x7e   : > { %4386 = shalt.err (!%p4383_p10)
}
  0x7f   : > { %4071 = dma.hbm_to_vmem [thread:$0]  (!%p4890_p12), %s5620_s11, 16, %s697_s6, [#allocation12]  }
  0x80   : > { %s4676_s2 = smov [#allocation14]   ;;  %s4677_s28 = smov [#allocation2]  }
  0x81   : > { %s723_s26 = sshll.u32 %s4676_s2, 4  ;;  %s636_s1 = sshll.u32 %s4677_s28, 4  ;;  %s724_s26 = int_to_ptr.vmem [resolvable:$true] %s723_s26  ;;  %s637_s1 = int_to_ptr.vmem [resolvable:$true] %s636_s1 }
  0x82   : > { %s4387_s0 = scalar_lea.hbm %s5550_s14, 16 }
  0x83   : > { %p4388_p5 = scmp.ne.s32.totalorder %s5550_s14, %s4387_s0  ;;  %p4394_p3 = scmp.lt.u32.totalorder %s4387_s0, %s5550_s14 }
  0x85   : > { %p4390_p10 = pnand %p4388_p5, %p4906_p0 }
  0x87   : > { %p4391_p2 = pneg %p4390_p10 }
  0x89   : > { %p4396_p4 = pnand %p4394_p3, %p4391_p2 }
  0x8b   : > { %4399 = shalt.err (!%p4396_p4)
}
  0x8c   : > { %s4400_s6 = scalar_lea.vmem %s724_s26, 16  ;;  %s4407_s22 = scalar_lea.vmem %s724_s26, 32 }
  0x8d   : > { %p4401_p7 = scmp.ne.s32.totalorder %s724_s26, %s4400_s6  ;;  %p4408_p13 = scmp.lt.s32.totalorder %s724_s26, %s724_s26 }
  0x8e   : > { %p4409_p1 = scmp.lt.s32.totalorder %s4407_s22, %s4400_s6 }
  0x8f   : > { %p4403_p8 = pnand %p4401_p7, %p4906_p0 }
  0x90   : > { %p4410_p6 = por %p4409_p1, %p4408_p13 }
  0x91   : > { %p4404_p11 = pneg %p4403_p8 }
  0x93   : > { %p4411_p9 = pnand %p4410_p6, %p4404_p11 }
  0x95   : > { %4414 = shalt.err (!%p4411_p9)
}
  0x96   : > { %4077 = dma.hbm_to_vmem [thread:$0]  (!%p4890_p12), %s5550_s14, 16, %s724_s26, [#allocation15]  }
  0x97   : > { %s5621_s25 = sld [smem:[#allocation40_spill]] }
  0x9d   : > { %s4415_s0 = scalar_lea.hbm %s5621_s25, 16 }
  0x9e   : > { %p4416_p5 = scmp.ne.s32.totalorder %s5621_s25, %s4415_s0  ;;  %p4422_p3 = scmp.lt.u32.totalorder %s4415_s0, %s5621_s25 }
  0xa0   : > { %p4418_p10 = pnand %p4416_p5, %p4906_p0 }
  0xa2   : > { %p4419_p2 = pneg %p4418_p10 }
  0xa4   : > { %p4424_p4 = pnand %p4422_p3, %p4419_p2 }
  0xa6   : > { %4427 = shalt.err (!%p4424_p4)
}
  0xa7   : > { %s4428_s22 = scalar_lea.vmem %s637_s1, 16  ;;  %s4435_s26 = scalar_lea.vmem %s637_s1, 32 }
  0xa8   : > { %p4429_p7 = scmp.ne.s32.totalorder %s637_s1, %s4428_s22  ;;  %p4436_p13 = scmp.lt.s32.totalorder %s637_s1, %s637_s1 }
  0xa9   : > { %p4437_p1 = scmp.lt.s32.totalorder %s4435_s26, %s4428_s22 }
  0xaa   : > { %p4431_p8 = pnand %p4429_p7, %p4906_p0 }
  0xab   : > { %p4438_p6 = por %p4437_p1, %p4436_p13 }
  0xac   : > { %p4432_p11 = pneg %p4431_p8 }
  0xae   : > { %p4439_p9 = pnand %p4438_p6, %p4432_p11 }
  0xb0   : > { %4442 = shalt.err (!%p4439_p9)
}
  0xb1   : > { %4056 = dma.hbm_to_vmem [thread:$0]  (!%p4890_p12), %s5621_s25, 16, %s637_s1, [#allocation3]  }
  0xb2   : > { %s4678_s30 = smov [#allocation7]   ;;  %s4679_s0 = smov [#allocation10]  }
  0xb3   : > { %s660_s27 = sshll.u32 %s4678_s30, 4  ;;  %s685_s23 = sshll.u32 %s4679_s0, 4  ;;  %s661_s27 = int_to_ptr.vmem [resolvable:$true] %s660_s27  ;;  %s686_s23 = int_to_ptr.vmem [resolvable:$true] %s685_s23 }
  0xb4   : > { %s5622_s6 = sld [smem:[#allocation42_spill]] }
  0xba   : > { %s5623_s29 = smov %s5622_s6  ;;  %s4443_s5 = scalar_lea.hbm %s5622_s6, 16 }
  0xbb   : > { %p4444_p5 = scmp.ne.s32.totalorder %s5623_s29, %s4443_s5  ;;  %p4450_p3 = scmp.lt.u32.totalorder %s4443_s5, %s5623_s29 }
  0xbd   : > { %p4446_p10 = pnand %p4444_p5, %p4906_p0 }
  0xbf   : > { %p4447_p2 = pneg %p4446_p10 }
  0xc1   : > { %p4452_p4 = pnand %p4450_p3, %p4447_p2 }
  0xc3   : > { %4455 = shalt.err (!%p4452_p4)
}
  0xc4   : > { %s4456_s1 = scalar_lea.vmem %s661_s27, 16  ;;  %s4463_s28 = scalar_lea.vmem %s661_s27, 32 }
  0xc5   : > { %p4457_p7 = scmp.ne.s32.totalorder %s661_s27, %s4456_s1  ;;  %p4464_p13 = scmp.lt.s32.totalorder %s661_s27, %s661_s27 }
  0xc6   : > { %p4465_p1 = scmp.lt.s32.totalorder %s4463_s28, %s4456_s1 }
  0xc7   : > { %p4459_p8 = pnand %p4457_p7, %p4906_p0 }
  0xc8   : > { %p4466_p6 = por %p4465_p1, %p4464_p13 }
  0xc9   : > { %p4460_p11 = pneg %p4459_p8 }
  0xcb   : > { %p4467_p9 = pnand %p4466_p6, %p4460_p11 }
  0xcd   : > { %4470 = shalt.err (!%p4467_p9)
}
  0xce   : > { %4062 = dma.hbm_to_vmem [thread:$0]  (!%p4890_p12), %s5623_s29, 16, %s661_s27, [#allocation6]  }
  0xcf   : > { %s4471_s8 = scalar_lea.hbm %s5546_s10, 16 }
  0xd0   : > { %p4472_p5 = scmp.ne.s32.totalorder %s5546_s10, %s4471_s8  ;;  %p4478_p3 = scmp.lt.u32.totalorder %s4471_s8, %s5546_s10 }
  0xd2   : > { %p4474_p10 = pnand %p4472_p5, %p4906_p0 }
  0xd4   : > { %p4475_p2 = pneg %p4474_p10 }
  0xd6   : > { %p4480_p4 = pnand %p4478_p3, %p4475_p2 }
  0xd8   : > { %4483 = shalt.err (!%p4480_p4)
}
  0xd9   : > { %s4484_s2 = scalar_lea.vmem %s686_s23, 16  ;;  %s4491_s27 = scalar_lea.vmem %s686_s23, 32 }
  0xda   : > { %p4485_p7 = scmp.ne.s32.totalorder %s686_s23, %s4484_s2  ;;  %p4492_p13 = scmp.lt.s32.totalorder %s686_s23, %s686_s23 }
  0xdb   : > { %p4493_p1 = scmp.lt.s32.totalorder %s4491_s27, %s4484_s2 }
  0xdc   : > { %p4487_p8 = pnand %p4485_p7, %p4906_p0 }
  0xdd   : > { %p4494_p6 = por %p4493_p1, %p4492_p13 }
  0xde   : > { %p4488_p11 = pneg %p4487_p8 }
  0xe0   : > { %p4495_p9 = pnand %p4494_p6, %p4488_p11 }
  0xe2   : > { %4498 = shalt.err (!%p4495_p9)
}
  0xe3   : > { %4068 = dma.hbm_to_vmem [thread:$0]  (!%p4890_p12), %s5546_s10, 16, %s686_s23, [#allocation9]  }
  0xe4   : > { %s4680_s30 = smov [#allocation13]   ;;  %s4681_s11 = smov [#allocation16]  }
  0xe5   : > { %s709_s0 = sshll.u32 %s4680_s30, 4  ;;  %s733_s5 = sshll.u32 %s4681_s11, 4  ;;  %s710_s0 = int_to_ptr.vmem [resolvable:$true] %s709_s0  ;;  %s734_s5 = int_to_ptr.vmem [resolvable:$true] %s733_s5 }
  0xe6   : > { %s4499_s6 = scalar_lea.hbm %s5549_s13, 512 }
  0xe7   : > { %p4500_p5 = scmp.ne.s32.totalorder %s5549_s13, %s4499_s6  ;;  %p4506_p3 = scmp.lt.u32.totalorder %s4499_s6, %s5549_s13 }
  0xe9   : > { %p4502_p10 = pnand %p4500_p5, %p4906_p0 }
  0xeb   : > { %p4503_p2 = pneg %p4502_p10 }
  0xed   : > { %p4508_p4 = pnand %p4506_p3, %p4503_p2 }
  0xef   : > { %4511 = shalt.err (!%p4508_p4)
}
  0xf0   : > { %s4512_s23 = scalar_lea.vmem %s710_s0, 512  ;;  %p4520_p13 = scmp.lt.s32.totalorder %s710_s0, %s710_s0 }
  0xf1   : > { %p4513_p7 = scmp.ne.s32.totalorder %s710_s0, %s4512_s23  ;;  %p4521_p1 = scmp.lt.s32.totalorder %s4512_s23, %s4512_s23 }
  0xf3   : > { %p4515_p8 = pnand %p4513_p7, %p4906_p0  ;;  %p4522_p6 = por %p4521_p1, %p4520_p13 }
  0xf5   : > { %p4516_p11 = pneg %p4515_p8 }
  0xf7   : > { %p4523_p9 = pnand %p4522_p6, %p4516_p11 }
  0xf9   : > { %4526 = shalt.err (!%p4523_p9)
}
  0xfa   : > { %s5624_s1 = smov 8   ;;  %s5625_s28 = smov 128  }
  0xfb   : > { %4074 = dma.hbm_to_vmem [thread:$0]  (!%p4890_p12), %s5549_s13, 512, %s710_s0, [#allocation12], %s5625_s28, %s5625_s28, %s5624_s1  }
  0xfc   : > { %s4527_s6 = scalar_lea.hbm %s5551_s15, 512 }
  0xfd   : > { %p4528_p5 = scmp.ne.s32.totalorder %s5551_s15, %s4527_s6  ;;  %p4534_p3 = scmp.lt.u32.totalorder %s4527_s6, %s5551_s15 }
  0xff   : > { %p4530_p10 = pnand %p4528_p5, %p4906_p0 }
 0x101   : > { %p4531_p2 = pneg %p4530_p10 }
 0x103   : > { %p4536_p4 = pnand %p4534_p3, %p4531_p2 }
 0x105   : > { %4539 = shalt.err (!%p4536_p4)
}
 0x106   : > { %s4540_s23 = scalar_lea.vmem %s734_s5, 512  ;;  %p4548_p13 = scmp.lt.s32.totalorder %s734_s5, %s734_s5 }
 0x107   : > { %p4541_p7 = scmp.ne.s32.totalorder %s734_s5, %s4540_s23  ;;  %p4549_p1 = scmp.lt.s32.totalorder %s4540_s23, %s4540_s23 }
 0x109   : > { %p4543_p8 = pnand %p4541_p7, %p4906_p0  ;;  %p4550_p6 = por %p4549_p1, %p4548_p13 }
 0x10b   : > { %p4544_p11 = pneg %p4543_p8 }
 0x10d   : > { %p4551_p9 = pnand %p4550_p6, %p4544_p11 }
 0x10f   : > { %4554 = shalt.err (!%p4551_p9)
}
 0x110   : > { %4080 = dma.hbm_to_vmem [thread:$0]  (!%p4890_p12), %s5551_s15, 512, %s734_s5, [#allocation15], %s5625_s28, %s5625_s28, %s5624_s1  }
 0x111   : > { %s4682_s11 = smov [#allocation17]   ;;  %s4555_s22 = scalar_lea.hbm %s5552_s16, 16 }
 0x112   : > { %s747_s8 = sshll.u32 %s4682_s11, 4  ;;  %p4556_p5 = scmp.ne.s32.totalorder %s5552_s16, %s4555_s22  ;;  %s748_s8 = int_to_ptr.vmem [resolvable:$true] %s747_s8 }
 0x113   : > { %p4562_p3 = scmp.lt.u32.totalorder %s4555_s22, %s5552_s16 }
 0x114   : > { %p4558_p10 = pnand %p4556_p5, %p4906_p0 }
 0x116   : > { %p4559_p2 = pneg %p4558_p10 }
 0x118   : > { %p4564_p4 = pnand %p4562_p3, %p4559_p2 }
 0x11a   : > { %4567 = shalt.err (!%p4564_p4)
}
 0x11b   : > { %s4568_s5 = scalar_lea.vmem %s748_s8, 16  ;;  %s4575_s1 = scalar_lea.vmem %s748_s8, 32 }
 0x11c   : > { %p4569_p7 = scmp.ne.s32.totalorder %s748_s8, %s4568_s5  ;;  %p4576_p13 = scmp.lt.s32.totalorder %s748_s8, %s748_s8 }
 0x11d   : > { %p4577_p1 = scmp.lt.s32.totalorder %s4575_s1, %s4568_s5 }
 0x11e   : > { %p4571_p8 = pnand %p4569_p7, %p4906_p0 }
 0x11f   : > { %p4578_p6 = por %p4577_p1, %p4576_p13 }
 0x120   : > { %p4572_p11 = pneg %p4571_p8 }
 0x122   : > { %p4579_p9 = pnand %p4578_p6, %p4572_p11 }
 0x124   : > { %4582 = shalt.err (!%p4579_p9)
}
 0x125   : > { %4083 = dma.hbm_to_vmem [thread:$0]  (!%p4890_p12), %s5552_s16, 16, %s748_s8, [#allocation18]  }
 0x126   : > { %p5626_p5 = scmp.ne.s32.totalorder %s5615_s9, 0 }
 0x127   : > { %p5627_p10 = scmp.eq.s32.totalorder (!%p5626_p5), %s4852_s7, 0 }
 0x128   : > { %816 = sbr.rel (%p5626_p5) target bundleno = 4525 (0x11ad), region = 120 }
 0x12f   : > { %4628 = dma.done.wait (%p5627_p10), [#allocation3], 16   ;;  %p5628_p0 = pmov %p5627_p10 }
 0x131   : > { %4630 = vsyncadd (%p5628_p0), [#allocation3], 4294967280  ;;  %p5629_p2 = pmov %p5628_p0 }
 0x132   : > { %p5630_p3 = pmov %p5628_p0 }
 0x133   : > { %4632 = dma.done.wait (%p5629_p2), [#allocation6], 528  }
 0x134   : > { %4634 = vsyncadd (%p5630_p3), [#allocation6], 4294966768  ;;  %p5631_p4 = pmov %p5628_p0 }
 0x135   : > { %p5632_p12 = pmov %p5628_p0 }
 0x136   : > { %4636 = dma.done.wait (%p5631_p4), [#allocation9], 32  }
 0x137   : > { %4638 = vsyncadd (%p5632_p12), [#allocation9], 4294967264  ;;  %p5633_p7 = pmov %p5628_p0 }
 0x138   : > { %p5634_p8 = pmov %p5628_p0 }
 0x139   : > { %4640 = dma.done.wait (%p5633_p7), [#allocation12], 528  }
 0x13a   : > { %4642 = vsyncadd (%p5634_p8), [#allocation12], 4294966768  ;;  %p5635_p11 = pmov %p5628_p0 }
 0x13b   : > { %p5636_p13 = pmov %p5628_p0 }
 0x13c   : > { %4644 = dma.done.wait (%p5635_p11), [#allocation15], 528  }
 0x13d   : > { %4646 = vsyncadd (%p5636_p13), [#allocation15], 4294966768  ;;  %p5637_p1 = pmov %p5628_p0 }
 0x13e   : > { %p5638_p6 = pmov %p5628_p0 }
 0x13f   : > { %4648 = dma.done.wait (%p5637_p1), [#allocation18], 16  }
 0x140   : > { %4650 = vsyncadd (%p5638_p6), [#allocation18], 4294967280  ;;  %p935_p9 = scmp.lt.s32.totalorder %s4852_s7, 1  ;;  %s5639_s11 = sld [smem:[#allocation38_spill]]  ;;  %v1056_v2 = vld [vmem:[#allocation5] sm:$0xff]  ;;  %vm974_vm0 = vcmask 261120  }
 0x141   : > { %s5640_s22 = sld [smem:[#allocation39_spill]]  ;;  %s5641_s5 = sld [smem:[#allocation35_spill]]  ;;  %v1057_v4 = vld [vmem:[#allocation5 + $0x8] sm:$0xff]  ;;  %v1058_v9 = vld [vmem:[#allocation5 + $0x10] sm:$0xff]  ;;  %v1059_v10 = vld [vmem:[#allocation5 + $0x18] sm:$0xff]  ;;  %v4684_v56 = vmov 0  }
 0x142   : > { %s936_s4 = scalar_select %p935_p9, %s4852_s7, 1  ;;  %v3893_v7 = vpack.c.bf16 %v1057_v4, %v1056_v2  ;;  %v3897_v12 = vpack.c.bf16 %v1059_v10, %v1058_v9  ;;  %v1198_v14 = vld [vmem:[%s5548_s12] sm:$0xff]  ;;  %v1199_v15 = vld [vmem:[%s5548_s12 + $0x8] sm:$0xff]  ;;  %v1200_v17 = vld [vmem:[%s5548_s12 + $0x10] sm:$0xff]  ;;  %4171 = vset.pattern.permute.xlu1 %v4684_v56  ;;  %4170 = vset.pattern.permute.xlu0 %v4684_v56  ;;  %vm1521_vm1 = vcmask 64512   ;;  %vm1530_vm2 = vcmask 130048  }
 0x143   : > { %v3901_v16 = vpack.c.bf16 %v1199_v15, %v1198_v14  ;;  %s5642_s27 = sld [smem:[#allocation36_spill]]  ;;  %v1201_v18 = vld [vmem:[%s5548_s12 + $0x18] sm:$0xff]  ;;  %v3501_v26 = vld [vmem:[#allocation2] ss:$0 sm:$0xff]  ;;  %v3504_v27 = vld [vmem:[#allocation7] ss:$0 sm:$0xff] }
 0x144   : > { %s5133_s9 = sshll.u32 %s936_s4, 4  ;;  %3894 = vmatprep.subr.bf16.mxu1 %v3893_v7  ;;  %v3905_v22 = vpack.c.bf16 %v1201_v18, %v1200_v17  ;;  %s5644_s6 = sld [smem:[#allocation43_spill]]  ;;  %vm1539_vm3 = vcmask 195584   ;;  %vm5318_vm4 = vmpackc.low %vm1521_vm1, %vm1521_vm1 }
 0x145   : > { %3896 = vmatpush3.bf16.msra.mxu1 %v3893_v7  ;;  %s4688_s4 = smov 88   ;;  %s4689_s3 = smov 80  }
 0x146   : > { %s5139_s8 = scalar_lea.vmem %s5639_s11, %s5133_s9  ;;  %3898 = vmatprep.subr.bf16.mxu1 %v3897_v12  ;;  %s5643_s11 = sld [smem:[#allocation37_spill]] }
 0x147   : > { %v963_v0 = vld [vmem:[%s5640_s22] sm:$0xff]  ;;  %v964_v1 = vld [vmem:[%s5640_s22 + $0x8] sm:$0xff]  ;;  %s939_s1 = scalar_lea.vmem %s5641_s5, %s5133_s9  ;;  %v965_v5 = vld [vmem:[%s5640_s22 + $0x10] sm:$0xff]  ;;  %s4690_s30 = smov 120  }
 0x148   : > { %v3885_v3 = vpack.c.bf16 %v964_v1, %v963_v0  ;;  %v966_v6 = vld [vmem:[%s5640_s22 + $0x18] sm:$0xff]  ;;  %v5158_v11 = vld [vmem:[%s5139_s8] sm:$0xff]  ;;  %v5180_v19 = vld [vmem:[%s5139_s8 + $0x8] sm:$0xff]  ;;  %s4694_s8 = smov 64   ;;  %s4697_s2 = smov 40  }
 0x149   : > { %v3889_v8 = vpack.c.bf16 %v966_v6, %v965_v5  ;;  %3698 = vmatprep.mubr.msk.f32.mxu0 %vm974_vm0, %v5158_v11  ;;  %v957_v13 = vld [vmem:[%s939_s1] sm:$0xff]  ;;  %s944_s23 = scalar_lea.vmem %s5642_s27, %s5133_s9  ;;  %3900 = vmatpush3.bf16.msra.mxu1 %v3897_v12  ;;  %v958_v20 = vld [vmem:[%s939_s1 + $0x8] sm:$0xff]  ;;  %s4695_s1 = smov 104  }
 0x14a   : > { %3886 = vmatprep.subr.bf16.mxu0 %v3885_v3  ;;  %3709 = vmatprep.mubr.msk.f32.mxu1 %vm974_vm0, %v957_v13  ;;  %v959_v21 = vld [vmem:[%s944_s23] sm:$0xff]  ;;  %v960_v23 = vld [vmem:[%s944_s23 + $0x8] sm:$0xff]  ;;  %s5645_s26 = smov %s5644_s6  ;;  %s5648_s23 = sld [smem:[#allocation46_spill]] }
 0x14b   : > { %3888 = vmatpush3.bf16.msra.mxu0 %v3885_v3  ;;  %3902 = vmatprep.subr.bf16.mxu1 %v3901_v16  ;;  %s5649_s0 = sld [smem:[#allocation47_spill]]  ;;  %s3579_s27 = sshll.u32 %s4852_s7, 8 }
 0x14c   : > { %3890 = vmatprep.subr.bf16.mxu0 %v3889_v8  ;;  %s949_s20 = scalar_lea.vmem %s5643_s11, %s5133_s9  ;;  %3710 = vmatmul.mubr.msk.f32.vlgmr.msra.gmra.mrb[0].mxu1 %vm974_vm0, %v958_v20  ;;  %s4683_s9 = smov 96  }
 0x14d   : > { %3712 = vmatprep.mubr.msk.f32.mxu1 %vm974_vm0, %v959_v21  ;;  %3904 = vmatpush3.bf16.msra.mxu1 %v3901_v16  ;;  %v961_v24 = vld [vmem:[%s949_s20] sm:$0xff]  ;;  %v962_v25 = vld [vmem:[%s949_s20 + $0x8] sm:$0xff]  ;;  %s4691_s11 = smov 112   ;;  %s4692_s20 = smov 56  }
 0x14e   : > { %3906 = vmatprep.subr.bf16.mxu1 %v3905_v22 }
 0x14f   : > { %3892 = vmatpush3.bf16.msra.mxu0 %v3889_v8 }
 0x150   : > { %3713 = vmatmul.mubr.msk.f32.gmra.mrb[2].mxu1 %vm974_vm0, %v960_v23 }
 0x151   : > { %3715 = vmatprep.mubr.msk.f32.mxu1 %vm974_vm0, %v961_v24  ;;  %3908 = vmatpush3.bf16.msra.mxu1 %v3905_v22 }
 0x152   : > { %3699 = vmatmul.mubr.msk.f32.vlgmr.msra.gmra.mrb[0].mxu0 %vm974_vm0, %v5180_v19 }
 0x154   : > { %3716 = vmatmul.mubr.msk.f32.gmra.mrb[4].mxu1 %vm974_vm0, %v962_v25 }
 0x155   : > { %3718 = vmatprep.mubr.msk.f32.mxu1 %vm974_vm0, %v5158_v11 }
 0x158   : > { %3719 = vmatmul.mubr.msk.f32.gmra.mrb[6].mxu1 %vm974_vm0, %v5180_v19 }
 0x21f   : > { %v3711_v30 = vpop.f32.mrb[0].mxu1 }
 0x220   : > { %v1157_v32 = vadd.f32 %v3711_v30, %v3504_v27  ;;  %v1151_v34 = vpop.f32.mrb[1].mxu1 }
 0x221   : > { %v1152_v35 = vadd.f32 %v3504_v27, %v1151_v34 }
 0x222   : > { %1558 = vrot.lane.b32.xlu0 %v1157_v32, %s4683_s9 }
 0x223   : > { %v3714_v38 = vpop.f32.mrb[2].mxu1 }
 0x224   : > { %v5198_v39 = vadd.f32 %v3714_v38, %v3504_v27  ;;  %v1161_v40 = vpop.f32.mrb[3].mxu1 }
 0x225   : > { %v3700_v28 = vpop.f32.mrb[0].mxu0  ;;  %v1162_v41 = vadd.f32 %v3504_v27, %v1161_v40 }
 0x226   : > { %v1053_v29 = vadd.f32 %v3700_v28, %v3501_v26  ;;  %v1047_v31 = vpop.f32.mrb[1].mxu0  ;;  %1556 = vrot.lane.b32.xlu0 %v1152_v35, %s4683_s9 }
 0x227   : > { %v1048_v33 = vadd.f32 %v3501_v26, %v1047_v31  ;;  %v3717_v43 = vpop.f32.mrb[4].mxu1  ;;  %1560 = vrot.lane.b32.xlu1 %v1162_v41, %s4683_s9 }
 0x228   : > { %v1191_v36 = vmul.f32 %v1157_v32, %v1053_v29  ;;  %v1193_v44 = vmul.f32 %v5198_v39, %v1053_v29  ;;  %v5205_v45 = vadd.f32 %v3717_v43, %v3504_v27  ;;  %v1171_v46 = vpop.f32.mrb[5].mxu1 }
 0x229   : > { %v1190_v37 = vmul.f32 %v1152_v35, %v1048_v33  ;;  %v1192_v42 = vmul.f32 %v1162_v41, %v1048_v33  ;;  %v5207_v47 = vadd.f32 %v3504_v27, %v1171_v46 }
 0x22a   : > { %v1195_v50 = vmul.f32 %v5205_v45, %v1053_v29 }
 0x22b   : > { %3729 = vmatprep.mubr.msk.f32.mxu1 %vm974_vm0, %v1190_v37  ;;  %v1194_v48 = vmul.f32 %v5207_v47, %v1048_v33  ;;  %v3720_v49 = vpop.f32.mrb[6].mxu1 }
 0x22c   : > { %3730 = vmatmul.mubr.msk.f32.vlgmr.msra.gmra.mrb[8].mxu1 %vm974_vm0, %v1191_v36  ;;  %v5213_v51 = vadd.f32 %v3720_v49, %v3504_v27  ;;  %v1181_v52 = vpop.f32.mrb[7].mxu1 }
 0x22d   : > { %3732 = vmatprep.mubr.msk.f32.mxu1 %vm974_vm0, %v1192_v42  ;;  %v5215_v53 = vadd.f32 %v3504_v27, %v1181_v52 }
 0x22e   : > { %v1197_v55 = vmul.f32 %v5213_v51, %v1053_v29 }
 0x22f   : > { %v1196_v54 = vmul.f32 %v5215_v53, %v1048_v33 }
 0x230   : > { %3733 = vmatmul.mubr.msk.f32.gmra.mrb[10].mxu1 %vm974_vm0, %v1193_v44 }
 0x231   : > { %3735 = vmatprep.mubr.msk.f32.mxu1 %vm974_vm0, %v1194_v48 }
 0x234   : > { %3736 = vmatmul.mubr.msk.f32.gmra.mrb[12].mxu1 %vm974_vm0, %v1195_v50 }
 0x235   : > { %3738 = vmatprep.mubr.msk.f32.mxu1 %vm974_vm0, %v1196_v54 }
 0x238   : > { %3739 = vmatmul.mubr.msk.f32.gmra.mrb[14].mxu1 %vm974_vm0, %v1197_v55 }
 0x2ff   : > { %v3731_v57 = vpop.f32.mrb[8].mxu1 }
 0x300   : > { %v1292_v58 = vpop.f32.mrb[9].mxu1  ;;  %v1332_v60 = vmul.f32 0.35355338, %v3731_v57 }
 0x301   : > { %v1331_v63 = vmul.f32 0.35355338, %v1292_v58 }
 0x303   : > { %v3734_v59 = vpop.f32.mrb[10].mxu1 }
 0x304   : > { %v1334_v61 = vmul.f32 0.35355338, %v3734_v59  ;;  %v1302_v62 = vpop.f32.mrb[11].mxu1 }
 0x305   : > { %v1333_v0 = vmul.f32 0.35355338, %v1302_v62 }
 0x306   : > { %v1340_v1 = vmax.f32 %v1332_v60, %v1334_v61 }
 0x307   : > { %v1339_v2 = vmax.f32 %v1331_v63, %v1333_v0  ;;  %v3737_v3 = vpop.f32.mrb[12].mxu1 }
 0x308   : > { %v1336_v4 = vmul.f32 0.35355338, %v3737_v3  ;;  %v1312_v5 = vpop.f32.mrb[13].mxu1  ;;  %v1597_v3 = vld [vmem:[%s5645_s26 + $0x18] sm:$0xff] }
 0x309   : > { %v1335_v6 = vmul.f32 0.35355338, %v1312_v5  ;;  %v1559_v5 = vpop.permute.xlu0 %1558 }
 0x30a   : > { %v1342_v7 = vmax.f32 %v1340_v1, %v1336_v4  ;;  %v4687_v1 = vmov 3  }
 0x30b   : > { %v1341_v8 = vmax.f32 %v1339_v2, %v1335_v6  ;;  %v3740_v9 = vpop.f32.mrb[14].mxu1 }
 0x30c   : > { %v1338_v10 = vmul.f32 0.35355338, %v3740_v9  ;;  %v1322_v12 = vpop.f32.mrb[15].mxu1 }
 0x30d   : > { %v1337_v13 = vmul.f32 0.35355338, %v1322_v12 }
 0x30e   : > { %v1344_v14 = vmax.f32 %v1342_v7, %v1338_v10  ;;  %v1557_v7 = vpop.permute.xlu0 %1556 }
 0x30f   : > { %v1343_v15 = vmax.f32 %v1341_v8, %v1337_v13 }
 0x310   : > { %v1346_v16 = vsub.f32 %v1332_v60, %v1344_v14  ;;  %v1352_v17 = vsub.f32 %v1334_v61, %v1344_v14  ;;  %v1358_v18 = vsub.f32 %v1336_v4, %v1344_v14  ;;  %v1364_v20 = vsub.f32 %v1338_v10, %v1344_v14 }
 0x311   : > { %v1345_v21 = vsub.f32 %v1331_v63, %v1343_v15  ;;  %v1351_v22 = vsub.f32 %v1333_v0, %v1343_v15  ;;  %v1357_v23 = vsub.f32 %v1335_v6, %v1343_v15  ;;  %v1363_v24 = vsub.f32 %v1337_v13, %v1343_v15  ;;  %v1561_v6 = vpop.permute.xlu1 %1560 }
 0x312   : > { %v1349_v25 = vmul.f32 1.442695, %v1346_v16  ;;  %v1355_v26 = vmul.f32 1.442695, %v1352_v17  ;;  %v1361_v27 = vmul.f32 1.442695, %v1358_v18 }
 0x313   : > { %v1367_v28 = vmul.f32 1.442695, %v1364_v20  ;;  %v1347_v29 = vmul.f32 1.442695, %v1345_v21  ;;  %v1353_v30 = vmul.f32 1.442695, %v1351_v22 }
 0x314   : > { %4239 = vpow2.f32 %v1349_v25  ;;  %v1359_v31 = vmul.f32 1.442695, %v1357_v23  ;;  %v1365_v32 = vmul.f32 1.442695, %v1363_v24  ;;  %v4685_v63 = vmov 1  }
 0x315   : > { %4241 = vpow2.f32 %v1355_v26  ;;  %v4686_v0 = vmov 2  }
 0x316   : > { %4243 = vpow2.f32 %v1361_v27 }
 0x317   : > { %4245 = vpow2.f32 %v1367_v28 }
 0x318   : > { %4247 = vpow2.f32 %v1347_v29 }
 0x319   : > { %4249 = vpow2.f32 %v1353_v30 }
 0x31a   : > { %4251 = vpow2.f32 %v1359_v31 }
 0x31b   : > { %4253 = vpow2.f32 %v1365_v32 }
 0x31e   : > { %v4240_v33 = vpop.eup %4239 }
 0x31f   : > { %v4242_v34 = vpop.eup %4241 }
 0x320   : > { %v4244_v35 = vpop.eup %4243  ;;  %v1370_v36 = vadd.f32 %v4242_v34, %v4240_v33 }
 0x321   : > { %v4246_v37 = vpop.eup %4245 }
 0x322   : > { %v4248_v38 = vpop.eup %4247  ;;  %v1372_v40 = vadd.f32 %v4244_v35, %v1370_v36 }
 0x323   : > { %v4250_v41 = vpop.eup %4249 }
 0x324   : > { %v1374_v42 = vadd.f32 %v4246_v37, %v1372_v40  ;;  %v1369_v43 = vadd.f32 %v4250_v41, %v4248_v38  ;;  %v4252_v44 = vpop.eup %4251 }
 0x325   : > { %v4254_v48 = vpop.eup %4253 }
 0x326   : > { %4255 = vrcp.f32 %v1374_v42  ;;  %v1371_v46 = vadd.f32 %v4252_v44, %v1369_v43 }
 0x328   : > { %v1373_v49 = vadd.f32 %v4254_v48, %v1371_v46 }
 0x32a   : > { %4257 = vrcp.f32 %v1373_v49 }
 0x330   : > { %v4256_v50 = vpop.eup %4255 }
 0x331   : > { %v1380_v52 = vmul.f32 %v4256_v50, %v4242_v34  ;;  %v1378_v54 = vmul.f32 %v4256_v50, %v4240_v33  ;;  %v1382_v55 = vmul.f32 %v4256_v50, %v4244_v35  ;;  %v1384_v57 = vmul.f32 %v4256_v50, %v4246_v37 }
 0x333   : > { %1402 = vperm.xlu1 %4171, %v1380_v52   ;;  %1392 = vperm.xlu0 %4170, %v1378_v54  }
 0x334   : > { %v4258_v58 = vpop.eup %4257 }
 0x335   : > { %v1377_v59 = vmul.f32 %v4258_v58, %v4248_v38  ;;  %v1379_v60 = vmul.f32 %v4258_v58, %v4250_v41  ;;  %v1381_v61 = vmul.f32 %v4258_v58, %v4252_v44  ;;  %v5225_v62 = vmul.f32 %v4258_v58, %v4254_v48 }
 0x337   : > { %4173 = vset.pattern.permute.xlu1 %v4685_v63  ;;  %4172 = vset.pattern.permute.xlu0 %v4685_v63 }
 0x338   : > { %1438 = vperm.xlu1 %4173, %v1380_v52   ;;  %1430 = vperm.xlu0 %4172, %v1378_v54  }
 0x33c   : > { %4175 = vset.pattern.permute.xlu1 %v4686_v0  ;;  %4174 = vset.pattern.permute.xlu0 %v4686_v0 }
 0x33d   : > { %1470 = vperm.xlu1 %4175, %v1380_v52   ;;  %1462 = vperm.xlu0 %4174, %v1378_v54  }
 0x341   : > { %4176 = vset.pattern.permute.xlu1 %v4684_v56  ;;  %4177 = vset.pattern.permute.xlu0 %v4685_v63 }
 0x342   : > { %1412 = vperm.xlu1 %4176, %v1382_v55   ;;  %1446 = vperm.xlu0 %4177, %v1382_v55  }
 0x346   : > { %4178 = vset.pattern.permute.xlu1 %v4687_v1  ;;  %4179 = vset.pattern.permute.xlu0 %v4687_v1 }
 0x347   : > { %1494 = vperm.xlu1 %4178, %v1378_v54   ;;  %1502 = vperm.xlu0 %4179, %v1380_v52  }
 0x34b   : > { %4181 = vset.pattern.permute.xlu1 %v4684_v56  ;;  %4180 = vset.pattern.permute.xlu0 %v4686_v0 }
 0x34c   : > { %1422 = vperm.xlu1 %4181, %v1384_v57   ;;  %1478 = vperm.xlu0 %4180, %v1382_v55  }
 0x350   : > { %4183 = vset.pattern.permute.xlu1 %v4687_v1  ;;  %4182 = vset.pattern.permute.xlu0 %v4685_v63 }
 0x351   : > { %1510 = vperm.xlu1 %4183, %v1382_v55   ;;  %1454 = vperm.xlu0 %4182, %v1384_v57  }
 0x355   : > { %1518 = vperm.xlu1 %4183, %v1384_v57   ;;  %4184 = vset.pattern.permute.xlu0 %v4686_v0 }
 0x356   : > { %1486 = vperm.xlu0 %4184, %v1384_v57  }
 0x359   : > { %4186 = vset.pattern.permute.xlu1 %v4685_v63 }
 0x35a   : > { %4185 = vset.pattern.permute.xlu0 %v4684_v56  ;;  %1426 = vperm.xlu1 %4186, %v1377_v59  }
 0x35b   : > { %1387 = vperm.xlu0 %4185, %v1377_v59  }
 0x35e   : > { %1434 = vperm.xlu1 %4186, %v1379_v60  }
 0x35f   : > { %1397 = vperm.xlu0 %4185, %v1379_v60  }
 0x362   : > { %4187 = vset.pattern.permute.xlu1 %v4686_v0 }
 0x363   : > { %1458 = vperm.xlu1 %4187, %v1377_v59   ;;  %4188 = vset.pattern.permute.xlu0 %v4686_v0 }
 0x364   : > { %1466 = vperm.xlu0 %4188, %v1379_v60  }
 0x367   : > { %4189 = vset.pattern.permute.xlu1 %v4684_v56 }
 0x368   : > { %1407 = vperm.xlu1 %4189, %v1381_v61   ;;  %4191 = vset.pattern.permute.xlu0 %v4687_v1 }
 0x369   : > { %1490 = vperm.xlu0 %4191, %v1377_v59  }
 0x36c   : > { %4190 = vset.pattern.permute.xlu1 %v4685_v63 }
 0x36d   : > { %1442 = vperm.xlu1 %4190, %v1381_v61   ;;  %1564 = vrot.lane.b32.xlu0 %v5207_v47, %s4683_s9  ;;  %v1594_v47 = vld [vmem:[%s5644_s6] sm:$0xff]  ;;  %s4696_s6 = smov 48  }
 0x371   : > { %4192 = vset.pattern.permute.xlu1 %v4687_v1  ;;  %1568 = vrot.lane.b32.xlu0 %v5215_v53, %s4683_s9  ;;  %v1595_v53 = vld [vmem:[%s5645_s26 + $0x8] sm:$0xff] }
 0x372   : > { %1498 = vperm.xlu1 %4192, %v1379_v60   ;;  %v3909_v2 = vpack.c.bf16 %v1595_v53, %v1594_v47 }
 0x374   : > { %3910 = vmatprep.subr.bf16.mxu1 %v3909_v2 }
 0x375   : > { %3912 = vmatpush3.bf16.msra.mxu1 %v3909_v2 }
 0x376   : > { %4193 = vset.pattern.permute.xlu1 %v4686_v0 }
 0x377   : > { %1474 = vperm.xlu1 %4193, %v1381_v61  }
 0x37b   : > { %4194 = vset.pattern.permute.xlu1 %v4684_v56  ;;  %v1596_v56 = vld [vmem:[%s5645_s26 + $0x10] sm:$0xff] }
 0x37c   : > { %1417 = vperm.xlu1 %4194, %v5225_v62   ;;  %v3913_v4 = vpack.c.bf16 %v1597_v3, %v1596_v56 }
 0x37e   : > { %3914 = vmatprep.subr.bf16.mxu1 %v3913_v4 }
 0x37f   : > { %3916 = vmatpush3.bf16.msra.mxu1 %v3913_v4 }
 0x380   : > { %4195 = vset.pattern.permute.xlu1 %v4685_v63 }
 0x381   : > { %1450 = vperm.xlu1 %4195, %v5225_v62  }
 0x385   : > { %4196 = vset.pattern.permute.xlu1 %v4687_v1 }
 0x386   : > { %1506 = vperm.xlu1 %4196, %v1381_v61  }
 0x38a   : > { %4197 = vset.pattern.permute.xlu1 %v4686_v0 }
 0x38b   : > { %1482 = vperm.xlu1 %4197, %v5225_v62  }
 0x38f   : > { %4198 = vset.pattern.permute.xlu1 %v4687_v1 }
 0x390   : > { %1514 = vperm.xlu1 %4198, %v5225_v62  }
 0x394   : > { %1562 = vrot.lane.b32.xlu1 %v5198_v39, %s4683_s9 }
 0x398   : > { %1566 = vrot.lane.b32.xlu1 %v5205_v45, %s4683_s9 }
 0x39c   : > { %1570 = vrot.lane.b32.xlu1 %v5213_v51, %s4683_s9 }
 0x3b2   : > { %v1403_v39 = vpop.permute.xlu1 %1402  ;;  %v1393_v8 = vpop.permute.xlu0 %1392 }
 0x3b7   : > { %v1439_v9 = vpop.permute.xlu1 %1438  ;;  %v1431_v13 = vpop.permute.xlu0 %1430 }
 0x3b8   : > { %v1525_v10 = vsel %vm1521_vm1, %v1403_v39, %v1439_v9  ;;  %v1523_v16 = vsel %vm1521_vm1, %v1393_v8, %v1431_v13 }
 0x3bc   : > { %v1471_v12 = vpop.permute.xlu1 %1470  ;;  %v1463_v15 = vpop.permute.xlu0 %1462 }
 0x3bd   : > { %v1534_v14 = vsel %vm1530_vm2, %v1525_v10, %v1471_v12  ;;  %v1532_v51 = vsel %vm1530_vm2, %v1523_v16, %v1463_v15 }
 0x3c1   : > { %v1413_v45 = vpop.permute.xlu1 %1412  ;;  %v1447_v23 = vpop.permute.xlu0 %1446 }
 0x3c6   : > { %v1495_v17 = vpop.permute.xlu1 %1494  ;;  %v1503_v26 = vpop.permute.xlu0 %1502 }
 0x3c7   : > { %v1541_v18 = vsel %vm1539_vm3, %v1532_v51, %v1495_v17 }
 0x3c8   : > { %v1581_v20 = vmul.f32 %v1559_v5, %v1541_v18  ;;  %v1543_v5 = vsel %vm1539_vm3, %v1534_v14, %v1503_v26 }
 0x3cb   : > { %v1423_v21 = vpop.permute.xlu1 %1422  ;;  %v1479_v28 = vpop.permute.xlu0 %1478 }
 0x3d0   : > { %v1511_v22 = vpop.permute.xlu1 %1510  ;;  %v1455_v30 = vpop.permute.xlu0 %1454 }
 0x3d1   : > { %v1529_v10 = vsel %vm1521_vm1, %v1423_v21, %v1455_v30 }
 0x3d4   : > { %v1519_v24 = vpop.permute.xlu1 %1518 }
 0x3d5   : > { %v1487_v32 = vpop.permute.xlu0 %1486 }
 0x3d6   : > { %v1538_v15 = vsel %vm1530_vm2, %v1529_v10, %v1487_v32 }
 0x3d7   : > { %v1547_v14 = vsel %vm1539_vm3, %v1538_v15, %v1519_v24 }
 0x3d9   : > { %v1427_v25 = vpop.permute.xlu1 %1426 }
 0x3da   : > { %v1388_v35 = vpop.permute.xlu0 %1387 }
 0x3db   : > { %v1522_v48 = vsel %vm1521_vm1, %v1388_v35, %v1427_v25 }
 0x3dd   : > { %v1435_v27 = vpop.permute.xlu1 %1434 }
 0x3de   : > { %v1398_v37 = vpop.permute.xlu0 %1397 }
 0x3df   : > { %v1524_v44 = vsel %vm1521_vm1, %v1398_v37, %v1435_v27 }
 0x3e2   : > { %v1459_v29 = vpop.permute.xlu1 %1458 }
 0x3e3   : > { %v1467_v40 = vpop.permute.xlu0 %1466  ;;  %v1531_v52 = vsel %vm1530_vm2, %v1522_v48, %v1459_v29 }
 0x3e4   : > { %v1533_v46 = vsel %vm1530_vm2, %v1524_v44, %v1467_v40  ;;  %v1735_v40 = vld [vmem:[#allocation13 + $0x10] sm:$0xff] }
 0x3e7   : > { %v1408_v31 = vpop.permute.xlu1 %1407 }
 0x3e8   : > { %v1491_v42 = vpop.permute.xlu0 %1490 }
 0x3e9   : > { %v1540_v55 = vsel %vm1539_vm3, %v1531_v52, %v1491_v42  ;;  %v1736_v42 = vld [vmem:[#allocation13 + $0x18] sm:$0xff] }
 0x3ea   : > { %v1580_v61 = vmul.f32 %v1557_v7, %v1540_v55  ;;  %v3524_v55 = vld [vmem:[#allocation10] ss:$0 sm:$0xff] }
 0x3ec   : > { %v1443_v33 = vpop.permute.xlu1 %1442  ;;  %v1565_v57 = vpop.permute.xlu0 %1564 }
 0x3ed   : > { %v1526_v49 = vsel %vm1521_vm1, %v1408_v31, %v1443_v33 }
 0x3f0   : > { %v1569_v53 = vpop.permute.xlu0 %1568 }
 0x3f1   : > { %v1499_v34 = vpop.permute.xlu1 %1498 }
 0x3f2   : > { %v1542_v50 = vsel %vm1539_vm3, %v1533_v46, %v1499_v34 }
 0x3f3   : > { %v1582_v60 = vmul.f32 %v1561_v6, %v1542_v50  ;;  %v1527_v6 = vsel %vm1521_vm1, %v1413_v45, %v1447_v23  ;;  %v3521_v45 = vld [vmem:[#allocation8] ss:$0 sm:$0xff] }
 0x3f4   : > { %v1536_v7 = vsel %vm1530_vm2, %v1527_v6, %v1479_v28 }
 0x3f5   : > { %v1588_v0 = vadd.f32 %v1582_v60, %v1580_v61  ;;  %v1545_v12 = vsel %vm1539_vm3, %v1536_v7, %v1511_v22 }
 0x3f6   : > { %v1475_v36 = vpop.permute.xlu1 %1474 }
 0x3f7   : > { %v1535_v54 = vsel %vm1530_vm2, %v1526_v49, %v1475_v36 }
 0x3fb   : > { %v1418_v38 = vpop.permute.xlu1 %1417 }
 0x400   : > { %v1451_v41 = vpop.permute.xlu1 %1450 }
 0x401   : > { %v1528_v63 = vsel %vm1521_vm1, %v1418_v38, %v1451_v41  ;;  %v1734_v38 = vld [vmem:[#allocation13 + $0x8] sm:$0xff] }
 0x405   : > { %v1507_v43 = vpop.permute.xlu1 %1506 }
 0x406   : > { %v1544_v58 = vsel %vm1539_vm3, %v1535_v54, %v1507_v43  ;;  %v3921_v43 = vpack.c.bf16 %v1736_v42, %v1735_v40 }
 0x407   : > { %v1584_v62 = vmul.f32 %v1565_v57, %v1544_v58  ;;  %v3525_v58 = vld [vmem:[#allocation11] ss:$0 sm:$0xff] }
 0x409   : > { %v1590_v56 = vadd.f32 %v1588_v0, %v1584_v62 }
 0x40a   : > { %v1483_v59 = vpop.permute.xlu1 %1482 }
 0x40b   : > { %v1537_v1 = vsel %vm1530_vm2, %v1528_v63, %v1483_v59 }
 0x40f   : > { %v1515_v47 = vpop.permute.xlu1 %1514 }
 0x410   : > { %v1546_v2 = vsel %vm1539_vm3, %v1537_v1, %v1515_v47  ;;  %v3526_v1 = vld [vmem:[#allocation14] ss:$0 sm:$0xff] }
 0x411   : > { %v1586_v3 = vmul.f32 %v1569_v53, %v1546_v2 }
 0x413   : > { %v1592_v4 = vadd.f32 %v1590_v56, %v1586_v3  ;;  %v1563_v39 = vpop.permute.xlu1 %1562 }
 0x414   : > { %v1583_v8 = vmul.f32 %v1563_v39, %v1543_v5 }
 0x415   : > { %3749 = vmatprep.mubr.msk.f32.mxu1 %vm974_vm0, %v1592_v4 }
 0x416   : > { %v1589_v9 = vadd.f32 %v1583_v8, %v1581_v20 }
 0x417   : > { %v1567_v13 = vpop.permute.xlu1 %1566 }
 0x418   : > { %v1585_v16 = vmul.f32 %v1567_v13, %v1545_v12 }
 0x41a   : > { %v1591_v51 = vadd.f32 %v1589_v9, %v1585_v16 }
 0x41b   : > { %v1571_v17 = vpop.permute.xlu1 %1570 }
 0x41c   : > { %v1587_v18 = vmul.f32 %v1571_v17, %v1547_v14 }
 0x41e   : > { %v1593_v25 = vadd.f32 %v1591_v51, %v1587_v18 }
 0x420   : > { %3750 = vmatmul.mubr.msk.f32.vlgmr.msra.gmra.mrb[16].mxu1 %vm974_vm0, %v1593_v25 }
 0x4f3   : > { %v3751_v23 = vpop.f32.mrb[16].mxu1 }
 0x4f4   : > { %v1683_v26 = vadd.f32 %v3751_v23, %v3521_v45  ;;  %v1677_v20 = vpop.f32.mrb[17].mxu1 }
 0x4f5   : > { %v1678_v27 = vadd.f32 %v3521_v45, %v1677_v20 }
 0x4f6   : > { %v1687_v21 = vadd.f32 %v1683_v26, %v5180_v19 }
 0x4f7   : > { %v1686_v22 = vadd.f32 %v1678_v27, %v5158_v11  ;;  %v1733_v11 = vld [vmem:[#allocation13] sm:$0xff] }
 0x4f8   : > { %v1693_v28 = vsel %vm974_vm0, %v1687_v21, 0.0  ;;  %v3917_v41 = vpack.c.bf16 %v1734_v38, %v1733_v11 }
 0x4f9   : > { %1694 = vadd.xlane.f32.xlu1 %v1693_v28  ;;  %v1690_v29 = vsel %vm974_vm0, %v1686_v22, 0.0 }
 0x4fa   : > { %1691 = vadd.xlane.f32.xlu0 %v1690_v29  ;;  %3918 = vmatprep.subr.bf16.mxu0 %v3917_v41 }
 0x4fb   : > { %3920 = vmatpush3.bf16.msra.mxu0 %v3917_v41 }
 0x4fc   : > { %3922 = vmatprep.subr.bf16.mxu0 %v3921_v43 }
 0x4ff   : > { %3924 = vmatpush3.bf16.msra.mxu0 %v3921_v43 }
 0x586   : > { %v1695_v24 = vpop.xlane.xlu1 %1694 }
 0x587   : > { %v1698_v30 = vmul.f32 0.03125, %v1695_v24  ;;  %v1692_v31 = vpop.xlane.xlu0 %1691 }
 0x588   : > { %v1697_v32 = vmul.f32 0.03125, %v1692_v31 }
 0x589   : > { %v1700_v33 = vsub.f32 %v1687_v21, %v1698_v30 }
 0x58a   : > { %v1699_v34 = vsub.f32 %v1686_v22, %v1697_v32 }
 0x58b   : > { %v1702_v37 = vmul.f32 %v1700_v33, %v1700_v33 }
 0x58c   : > { %v1701_v35 = vmul.f32 %v1699_v34, %v1699_v34 }
 0x58d   : > { %v1706_v19 = vsel %vm974_vm0, %v1702_v37, 0.0 }
 0x58e   : > { %v1703_v36 = vsel %vm974_vm0, %v1701_v35, 0.0 }
 0x58f   : > { %1704 = vadd.xlane.f32.xlu0 %v1703_v36 }
 0x593   : > { %1707 = vadd.xlane.f32.xlu0 %v1706_v19 }
 0x61c   : > { %v1705_v44 = vpop.xlane.xlu0 %1704 }
 0x61d   : > { %v1709_v46 = vmul.f32 0.03125, %v1705_v44 }
 0x61f   : > { %v1711_v48 = vadd.f32 1e-05, %v1709_v46 }
 0x620   : > { %v1708_v49 = vpop.xlane.xlu0 %1707 }
 0x621   : > { %4259 = vrsqrt.f32 %v1711_v48  ;;  %v1710_v50 = vmul.f32 0.03125, %v1708_v49 }
 0x623   : > { %v1712_v52 = vadd.f32 1e-05, %v1710_v50 }
 0x625   : > { %4261 = vrsqrt.f32 %v1712_v52 }
 0x62b   : > { %v4260_v54 = vpop.eup %4259 }
 0x62c   : > { %v1715_v57 = vmul.f32 %v4260_v54, %v1699_v34 }
 0x62e   : > { %v1723_v59 = vmul.f32 %v3524_v55, %v1715_v57 }
 0x62f   : > { %v4262_v60 = vpop.eup %4261 }
 0x630   : > { %v1716_v61 = vmul.f32 %v4262_v60, %v1700_v33  ;;  %v5290_v62 = vadd.f32 %v3525_v58, %v1723_v59 }
 0x632   : > { %v1724_v63 = vmul.f32 %v3524_v55, %v1716_v61  ;;  %3760 = vmatprep.mubr.msk.f32.mxu0 %vm974_vm0, %v5290_v62 }
 0x634   : > { %v5294_v0 = vadd.f32 %v3525_v58, %v1724_v63 }
 0x636   : > { %3761 = vmatmul.mubr.msk.f32.vlgmr.msra.gmra.mrb[2].mxu0 %vm974_vm0, %v5294_v0 }
 0x709   : > { %v3762_v47 = vpop.f32.mrb[2].mxu0 }
 0x70a   : > { %v5298_v53 = vadd.f32 %v3762_v47, %v3526_v1  ;;  %v1816_v2 = vpop.f32.mrb[3].mxu0 }
 0x70b   : > { %v5300_v56 = vadd.f32 %v3526_v1, %v1816_v2 }
 0x70d   : > { %3767 = vmatprep.mubr.msk.f32.mxu1 %vm1521_vm1, %v5300_v56  ;;  %v5306_v3 = vpack.i.bf16 %v5298_v53, %v5300_v56 }
 0x70f   : > { %4205 = vrot.lane.b32.xlu0 %v5306_v3, %s4688_s4  ;;  %4200 = vrot.lane.b32.xlu1 %v5306_v3, %s4683_s9  ;;  %s4693_s9 = smov 72   ;;  %s5650_s4 = sld [smem:[#allocation28_spill]] }
 0x713   : > { %4210 = vrot.lane.b32.xlu0 %v5306_v3, %s4689_s3  ;;  %2026 = vrot.lane.b32.xlu1 %v5300_v56, %s4690_s30 }
 0x715   : > { %s932_s3 = sand.u32 1, %s5650_s4   ;;  %s5654_s4 = sld [smem:[#allocation50_spill]] }
 0x717   : > { %2393 = vrot.lane.b32.xlu0 %v5298_v53, %s4691_s11  ;;  %2028 = vrot.lane.b32.xlu1 %v5298_v53, %s4690_s30 }
 0x71b   : > { %2391 = vrot.lane.b32.xlu1 %v5300_v56, %s4691_s11  ;;  %s5490_s30 = scalar_lea.hbm %s5654_s4, %s3579_s27  ;;  %s5495_s11 = scalar_lea.sflag [#allocation4], %s932_s3 }
 0x781   : > { %v4206_v4 = vpop.permute.xlu0 %4205  ;;  %v4201_v5 = vpop.permute.xlu1 %4200 }
 0x782   : > { %v4208_v39 = vunpack.i.h.bf16 %v4206_v4  ;;  %v4207_v8 = vunpack.i.l.bf16 %v4206_v4  ;;  %v4203_v6 = vunpack.i.h.bf16 %v4201_v5  ;;  %v4202_v7 = vunpack.i.l.bf16 %v4201_v5 }
 0x784   : > { %v3925_v10 = vpack.c.bf16 %v4203_v6, %v4202_v7  ;;  %v3935_v12 = vpack.c.bf16 %v4208_v39, %v4207_v8 }
 0x785   : > { %v4211_v13 = vpop.permute.xlu0 %4210  ;;  %v2027_v51 = vpop.permute.xlu1 %2026 }
 0x786   : > { %3927 = vmatprep.subr.msk.bf16.mxu1 %vm5318_vm4, %v3925_v10  ;;  %v4213_v15 = vunpack.i.h.bf16 %v4211_v13  ;;  %v4212_v16 = vunpack.i.l.bf16 %v4211_v13 }
 0x787   : > { %3930 = vmatpush3.bf16.xpose.msk.msra.mxu1 %vm5318_vm4, %v3925_v10 }
 0x788   : > { %3937 = vmatprep.subr.msk.bf16.mxu1 %vm5318_vm4, %v3935_v12  ;;  %v3945_v14 = vpack.c.bf16 %v4213_v15, %v4212_v16 }
 0x789   : > { %v2029_v17 = vpop.permute.xlu1 %2028  ;;  %v2394_v25 = vpop.permute.xlu0 %2393 }
 0x78d   : > { %v2392_v18 = vpop.permute.xlu1 %2391 }
 0x78e   : > { %3768 = vmatmul.mubr.msk.f32.vlgmr.msra.gmra.mrb[18].mxu1 %vm1521_vm1, %v5298_v53 }
 0x78f   : > { %3940 = vmatpush3.bf16.xpose.msk.msra.mxu1 %vm5318_vm4, %v3935_v12  ;;  %3781 = vmatprep.mubr.msk.f32.mxu1 %vm1521_vm1, %v2027_v51 }
 0x790   : > { %3947 = vmatprep.subr.msk.bf16.mxu1 %vm5318_vm4, %v3945_v14 }
 0x796   : > { %3782 = vmatmul.mubr.msk.f32.vlgmr.msra.gmra.mrb[20].mxu1 %vm1521_vm1, %v2029_v17 }
 0x797   : > { %3950 = vmatpush3.bf16.xpose.msk.msra.mxu1 %vm5318_vm4, %v3945_v14  ;;  %3805 = vmatprep.mubr.msk.f32.mxu1 %vm1521_vm1, %v2392_v18 }
 0x79e   : > { %3806 = vmatmul.mubr.msk.f32.vlgmr.msra.gmra.mrb[22].mxu1 %vm1521_vm1, %v2394_v25 }
 0x861   : > { %v3769_v45 = vpop.f32.mrb[18].mxu1 }
 0x862   : > { %v1915_v23 = vmul.f32 0.35355338, %v3769_v45  ;;  %v1905_v26 = vpop.f32.mrb[19].mxu1 }
 0x863   : > { %v1914_v20 = vmul.f32 0.35355338, %v1905_v26 }
 0x864   : > { %v1919_v27 = vsel %vm1530_vm2, %v1915_v23, -inf }
 0x865   : > { %1920 = vmax.xlane.f32.xlu0 %v1919_v27  ;;  %v1916_v21 = vsel %vm1530_vm2, %v1914_v20, -inf }
 0x866   : > { %1917 = vmax.xlane.f32.xlu1 %v1916_v21 }
 0x869   : > { %v3783_v22 = vpop.f32.mrb[20].mxu1 }
 0x86a   : > { %v2118_v28 = vmul.f32 0.35355338, %v3783_v22  ;;  %v2108_v29 = vpop.f32.mrb[21].mxu1 }
 0x86b   : > { %v2117_v24 = vmul.f32 0.35355338, %v2108_v29 }
 0x86c   : > { %v2122_v30 = vsel %vm1530_vm2, %v2118_v28, -inf }
 0x86d   : > { %2123 = vmax.xlane.f32.xlu1 %v2122_v30  ;;  %v2119_v31 = vsel %vm1530_vm2, %v2117_v24, -inf }
 0x86e   : > { %2120 = vmax.xlane.f32.xlu0 %v2119_v31 }
 0x871   : > { %v3807_v32 = vpop.f32.mrb[22].mxu1 }
 0x872   : > { %v2473_v33 = vpop.f32.mrb[23].mxu1  ;;  %v2483_v59 = vmul.f32 0.35355338, %v3807_v32  ;;  %v2228_v32 = vld [vmem:[#allocation16 + $0x8] sm:$0xff] }
 0x873   : > { %v2482_v58 = vmul.f32 0.35355338, %v2473_v33  ;;  %v2025_v33 = vld [vmem:[#allocation16] sm:$0xff] }
 0x874   : > { %v2487_v61 = vsel %vm1530_vm2, %v2483_v59, -inf }
 0x875   : > { %v2484_v60 = vsel %vm1530_vm2, %v2482_v58, -inf }
 0x8f2   : > { %v1921_v34 = vpop.xlane.xlu0 %1920 }
 0x8f3   : > { %v1923_v35 = vsub.f32 %v1915_v23, %v1921_v34  ;;  %v1918_v36 = vpop.xlane.xlu1 %1917 }
 0x8f4   : > { %v1922_v37 = vsub.f32 %v1914_v20, %v1918_v36 }
 0x8f5   : > { %v1926_v19 = vmul.f32 1.442695, %v1923_v35 }
 0x8f6   : > { %v1924_v11 = vmul.f32 1.442695, %v1922_v37 }
 0x8f7   : > { %4263 = vpow2.f32 %v1926_v19 }
 0x8f8   : > { %4265 = vpow2.f32 %v1924_v11 }
 0x8fa   : > { %v2124_v38 = vpop.xlane.xlu1 %2123 }
 0x8fb   : > { %v2126_v40 = vsub.f32 %v2118_v28, %v2124_v38  ;;  %v2121_v41 = vpop.xlane.xlu0 %2120 }
 0x8fc   : > { %v2125_v42 = vsub.f32 %v2117_v24, %v2121_v41 }
 0x8fd   : > { %v2129_v43 = vmul.f32 1.442695, %v2126_v40 }
 0x8fe   : > { %v2127_v44 = vmul.f32 1.442695, %v2125_v42 }
 0x8ff   : > { %4267 = vpow2.f32 %v2129_v43 }
 0x900   : > { %4269 = vpow2.f32 %v2127_v44 }
 0x901   : > { %v4264_v46 = vpop.eup %4263 }
 0x902   : > { %v4266_v48 = vpop.eup %4265  ;;  %v1931_v49 = vsel %vm1530_vm2, %v4264_v46, 0.0 }
 0x903   : > { %1932 = vadd.xlane.f32.xlu1 %v1931_v49  ;;  %v1928_v50 = vsel %vm1530_vm2, %v4266_v48, 0.0 }
 0x904   : > { %1929 = vadd.xlane.f32.xlu0 %v1928_v50 }
 0x909   : > { %v5346_v52 = vpop.eup %4267 }
 0x90a   : > { %v4270_v54 = vpop.eup %4269  ;;  %v2134_v55 = vsel %vm1530_vm2, %v5346_v52, 0.0 }
 0x90b   : > { %2135 = vadd.xlane.f32.xlu1 %v2134_v55  ;;  %v2131_v57 = vsel %vm1530_vm2, %v4270_v54, 0.0  ;;  %v2593_v55 = vld [vmem:[#allocation16 + $0x10] sm:$0xff] }
 0x90c   : > { %2132 = vadd.xlane.f32.xlu0 %v2131_v57 }
 0x91c   : > { %4220 = vrot.lane.b32.xlu1 %v5306_v3, %s4692_s20  ;;  %s5651_s20 = sld [smem:[#allocation48_spill]] }
 0x920   : > { %4225 = vrot.lane.b32.xlu1 %v5306_v3, %s4693_s9  ;;  %s3492_s9 = sshll.u32 %s932_s3, 4 }
 0x922   : > { %4215 = vrot.lane.b32.xlu0 %v5306_v3, %s4694_s8 }
 0x924   : > { %2679 = vrot.lane.b32.xlu1 %v5298_v53, %s4695_s1 }
 0x926   : > { %2677 = vrot.lane.b32.xlu0 %v5300_v56, %s4695_s1 }
 0x945   : > { %2485 = vmax.xlane.f32.xlu0 %v2484_v60 }
 0x948   : > { %2488 = vmax.xlane.f32.xlu1 %v2487_v61 }
 0x959   : > { %4230 = vrot.lane.b32.xlu1 %v5306_v3, %s4696_s6  ;;  %s5652_s6 = sld [smem:[#allocation49_spill]] }
 0x95d   : > { %4235 = vrot.lane.b32.xlu1 %v5306_v3, %s4697_s2  ;;  %s5653_s2 = sld [smem:[#allocation33_spill]] }
 0x963   : > { %p5655_p10 = scmp.ne.s32.totalorder %s5653_s2, 0 }
 0x990   : > { %v1933_v1 = vpop.xlane.xlu1 %1932 }
 0x991   : > { %v1930_v63 = vpop.xlane.xlu0 %1929 }
 0x992   : > { %4271 = vrcp.f32 %v1930_v63 }
 0x993   : > { %4273 = vrcp.f32 %v1933_v1 }
 0x998   : > { %v2136_v47 = vpop.xlane.xlu1 %2135 }
 0x999   : > { %v2133_v53 = vpop.xlane.xlu0 %2132 }
 0x99a   : > { %4275 = vrcp.f32 %v2133_v53 }
 0x99b   : > { %4277 = vrcp.f32 %v2136_v47 }
 0x99c   : > { %v4272_v2 = vpop.eup %4271  ;;  %v4221_v56 = vpop.permute.xlu1 %4220 }
 0x99d   : > { %v4216_v4 = vpop.permute.xlu0 %4215  ;;  %v1936_v5 = vmul.f32 %v4272_v2, %v4266_v48  ;;  %v4223_v39 = vunpack.i.h.bf16 %v4221_v56  ;;  %v4222_v8 = vunpack.i.l.bf16 %v4221_v56  ;;  %v4274_v12 = vpop.eup %4273 }
 0x99e   : > { %v4218_v6 = vunpack.i.h.bf16 %v4216_v4  ;;  %v4217_v7 = vunpack.i.l.bf16 %v4216_v4  ;;  %v1937_v18 = vmul.f32 %v4274_v12, %v4264_v46 }
 0x99f   : > { %3774 = vmatprep.mubr.msk.f32.mxu0 %vm1530_vm2, %v1936_v5  ;;  %v3941_v51 = vpack.c.bf16 %v4223_v39, %v4222_v8 }
 0x9a0   : > { %v3931_v10 = vpack.c.bf16 %v4218_v6, %v4217_v7  ;;  %v4226_v3 = vpop.permute.xlu1 %4225 }
 0x9a1   : > { %v4228_v13 = vunpack.i.h.bf16 %v4226_v3  ;;  %v4227_v15 = vunpack.i.l.bf16 %v4226_v3  ;;  %v2678_v16 = vpop.permute.xlu0 %2677  ;;  %v2879_v3 = vld [vmem:[#allocation16 + $0x18] sm:$0xff] }
 0x9a2   : > { %3932 = vmatprep.subr.bf16.mxu0 %v3931_v10  ;;  %3824 = vmatprep.mubr.msk.f32.mxu1 %vm1521_vm1, %v2678_v16 }
 0x9a3   : > { %v3955_v14 = vpack.c.bf16 %v4228_v13, %v4227_v15  ;;  %3934 = vmatpush3.bf16.msra.mxu0 %v3931_v10 }
 0x9a4   : > { %v4276_v17 = vpop.eup %4275  ;;  %3942 = vmatprep.subr.bf16.mxu0 %v3941_v51  ;;  %v2680_v26 = vpop.permute.xlu1 %2679 }
 0x9a5   : > { %v4278_v25 = vpop.eup %4277  ;;  %3957 = vmatprep.subr.msk.bf16.mxu1 %vm5318_vm4, %v3955_v14  ;;  %v2139_v45 = vmul.f32 %v4276_v17, %v4270_v54 }
 0x9a6   : > { %3775 = vmatmul.mubr.msk.f32.vlgmr.msra.gmra.mrb[4].mxu0 %vm1530_vm2, %v1937_v18  ;;  %3960 = vmatpush3.bf16.xpose.msk.msra.mxu1 %vm5318_vm4, %v3955_v14  ;;  %v2140_v23 = vmul.f32 %v4278_v25, %v5346_v52  ;;  %v3561_v25 = vld [vmem:[#allocation17] ss:$0 sm:$0xff] }
 0x9a7   : > { %3944 = vmatpush3.bf16.msra.mxu0 %v3941_v51  ;;  %3788 = vmatprep.mubr.msk.f32.mxu0 %vm1530_vm2, %v2139_v45 }
 0x9a8   : > { %3791 = vmatprep.subr.mxu0 %v2228_v32 }
 0x9aa   : > { %3789 = vmatmul.mubr.msk.f32.vlgmr.msra.gmra.mrb[6].mxu0 %vm1530_vm2, %v2140_v23 }
 0x9ab   : > { %3792 = vmatpush3.msra.mxu0 %v2228_v32 }
 0x9ac   : > { %3796 = vmatprep.subr.mxu0 %v2025_v33 }
 0x9ad   : > { %3825 = vmatmul.mubr.msk.f32.vlgmr.msra.gmra.mrb[24].mxu1 %vm1521_vm1, %v2680_v26 }
 0x9d2   : > { %v2486_v20 = vpop.xlane.xlu0 %2485 }
 0x9d3   : > { %v2490_v27 = vsub.f32 %v2482_v58, %v2486_v20 }
 0x9d5   : > { %v2492_v21 = vmul.f32 1.442695, %v2490_v27  ;;  %v2489_v22 = vpop.xlane.xlu1 %2488 }
 0x9d6   : > { %v2491_v28 = vsub.f32 %v2483_v59, %v2489_v22 }
 0x9d7   : > { %4279 = vpow2.f32 %v2492_v21 }
 0x9d8   : > { %v2494_v29 = vmul.f32 1.442695, %v2491_v28 }
 0x9d9   : > { %v4231_v35 = vpop.permute.xlu1 %4230 }
 0x9da   : > { %4281 = vpow2.f32 %v2494_v29  ;;  %v4233_v11 = vunpack.i.h.bf16 %v4231_v35  ;;  %v4232_v38 = vunpack.i.l.bf16 %v4231_v35  ;;  %v3018_v35 = vld [vmem:[%s5555_s19] sm:$0xff] }
 0x9dc   : > { %v3951_v42 = vpack.c.bf16 %v4233_v11, %v4232_v38  ;;  %v3021_v11 = vld [vmem:[%s5555_s19 + $0x18] sm:$0xff] }
 0x9dd   : > { %v4236_v52 = vpop.permute.xlu1 %4235 }
 0x9de   : > { %v4238_v57 = vunpack.i.h.bf16 %v4236_v52  ;;  %v4237_v58 = vunpack.i.l.bf16 %v4236_v52  ;;  %v3118_v52 = vld [vmem:[%s5557_s21 + $0x30] sm:$0xff] }
 0x9e0   : > { %v3961_v63 = vpack.c.bf16 %v4238_v57, %v4237_v58  ;;  %v3120_v57 = vld [vmem:[%s5557_s21 + $0x40] sm:$0xff]  ;;  %v3121_v58 = vld [vmem:[%s5557_s21 + $0x48] sm:$0xff] }
 0x9e1   : > { %v4280_v9 = vpop.eup %4279 }
 0x9e2   : > { %v2496_v24 = vsel %vm1530_vm2, %v4280_v9, 0.0 }
 0x9e3   : > { %2497 = vadd.xlane.f32.xlu0 %v2496_v24 }
 0x9e4   : > { %v4282_v30 = vpop.eup %4281 }
 0x9e5   : > { %v2499_v31 = vsel %vm1530_vm2, %v4282_v30, 0.0 }
 0x9e7   : > { %2500 = vadd.xlane.f32.xlu0 %v2499_v31 }
 0xa70   : > { %v2498_v34 = vpop.xlane.xlu0 %2497 }
 0xa71   : > { %4283 = vrcp.f32 %v2498_v34 }
 0xa74   : > { %v2501_v37 = vpop.xlane.xlu0 %2500 }
 0xa75   : > { %4285 = vrcp.f32 %v2501_v37  ;;  %v3020_v37 = vld [vmem:[%s5555_s19 + $0x10] sm:$0xff] }
 0xa76   : > { %v3969_v38 = vpack.c.bf16 %v3021_v11, %v3020_v37 }
 0xa79   : > { %v3776_v36 = vpop.f32.mrb[4].mxu0 }
 0xa7a   : > { %v2016_v19 = vpop.f32.mrb[5].mxu0 }
 0xa7b   : > { %v4284_v50 = vpop.eup %4283 }
 0xa7c   : > { %v2504_v60 = vmul.f32 %v4284_v50, %v4280_v9 }
 0xa7d   : > { %v3790_v40 = vpop.f32.mrb[6].mxu0 }
 0xa7e   : > { %v2219_v41 = vpop.f32.mrb[7].mxu0 }
 0xa7f   : > { %3793 = vmatprep.mubr.msk.f32.mxu0 %vm1521_vm1, %v2219_v41  ;;  %v4286_v54 = vpop.eup %4285  ;;  %v3113_v41 = vld [vmem:[%s5557_s21 + $0x8] sm:$0xff] }
 0xa80   : > { %3794 = vmatmul.mubr.msk.f32.vlgmr.msra.gmra.mrb[8].mxu0 %vm1521_vm1, %v3790_v40  ;;  %v3826_v43 = vpop.f32.mrb[24].mxu1  ;;  %v2505_v61 = vmul.f32 %v4286_v54, %v4282_v30  ;;  %v3112_v40 = vld [vmem:[%s5557_s21] sm:$0xff]  ;;  %v3119_v54 = vld [vmem:[%s5557_s21 + $0x38] sm:$0xff] }
 0xa81   : > { %3797 = vmatpush3.msra.mxu0 %v2025_v33  ;;  %3798 = vmatprep.mubr.msk.f32.mxu0 %vm1521_vm1, %v2016_v19  ;;  %v2759_v44 = vpop.f32.mrb[25].mxu1  ;;  %v2769_v48 = vmul.f32 0.35355338, %v3826_v43  ;;  %v3973_v43 = vpack.c.bf16 %v3113_v41, %v3112_v40 }
 0xa82   : > { %3952 = vmatprep.subr.bf16.mxu0 %v3951_v42  ;;  %v2768_v46 = vmul.f32 0.35355338, %v2759_v44  ;;  %v3115_v44 = vld [vmem:[%s5557_s21 + $0x18] sm:$0xff] }
 0xa83   : > { %v2773_v59 = vsel %vm1530_vm2, %v2769_v48, -inf }
 0xa84   : > { %v2770_v49 = vsel %vm1530_vm2, %v2768_v46, -inf }
 0xa85   : > { %2771 = vmax.xlane.f32.xlu0 %v2770_v49  ;;  %v3117_v49 = vld [vmem:[%s5557_s21 + $0x28] sm:$0xff] }
 0xa88   : > { %3799 = vmatmul.mubr.msk.f32.vlgmr.msra.gmra.mrb[8].mxu0 %vm1521_vm1, %v3776_v36  ;;  %v3019_v36 = vld [vmem:[%s5555_s19 + $0x8] sm:$0xff] }
 0xa89   : > { %3954 = vmatpush3.bf16.msra.mxu0 %v3951_v42  ;;  %2774 = vmax.xlane.f32.xlu0 %v2773_v59  ;;  %v3965_v19 = vpack.c.bf16 %v3019_v36, %v3018_v35  ;;  %v3114_v42 = vld [vmem:[%s5557_s21 + $0x10] sm:$0xff]  ;;  %v3989_v59 = vpack.c.bf16 %v3121_v58, %v3120_v57 }
 0xa8a   : > { %3812 = vmatprep.mubr.msk.f32.mxu0 %vm1530_vm2, %v2504_v60  ;;  %3815 = vmatprep.subr.mxu0 %v2593_v55  ;;  %v3122_v60 = vld [vmem:[%s5557_s21 + $0x50] sm:$0xff] }
 0xa8b   : > { %3966 = vmatprep.subr.bf16.mxu1 %v3965_v19 }
 0xa8c   : > { %3813 = vmatmul.mubr.msk.f32.vlgmr.msra.gmra.mrb[10].mxu0 %vm1530_vm2, %v2505_v61  ;;  %3968 = vmatpush3.bf16.msra.mxu1 %v3965_v19  ;;  %v3123_v61 = vld [vmem:[%s5557_s21 + $0x58] sm:$0xff] }
 0xa8d   : > { %3816 = vmatpush3.msra.mxu0 %v2593_v55  ;;  %3970 = vmatprep.subr.bf16.mxu1 %v3969_v38  ;;  %v3985_v55 = vpack.c.bf16 %v3119_v54, %v3118_v52  ;;  %v3568_v52 = vld [vmem:[%s5651_s20] ss:$0 sm:$0xff]  ;;  %s4698_s20 = smov [#allocation19]  }
 0xa8e   : > { %3962 = vmatprep.subr.bf16.mxu0 %v3961_v63 }
 0xa90   : > { %3972 = vmatpush3.bf16.msra.mxu1 %v3969_v38 }
 0xb12   : > { %v2772_v1 = vpop.xlane.xlu0 %2771 }
 0xb13   : > { %v2776_v47 = vsub.f32 %v2768_v46, %v2772_v1  ;;  %v3977_v46 = vpack.c.bf16 %v3115_v44, %v3114_v42  ;;  %v3124_v1 = vld [vmem:[%s5557_s21 + $0x60] sm:$0xff] }
 0xb15   : > { %v2778_v53 = vmul.f32 1.442695, %v2776_v47  ;;  %v3125_v47 = vld [vmem:[%s5557_s21 + $0x68] sm:$0xff] }
 0xb16   : > { %v2775_v2 = vpop.xlane.xlu0 %2774 }
 0xb17   : > { %4287 = vpow2.f32 %v2778_v53  ;;  %v2777_v56 = vsub.f32 %v2769_v48, %v2775_v2  ;;  %v3116_v48 = vld [vmem:[%s5557_s21 + $0x20] sm:$0xff]  ;;  %v3997_v53 = vpack.c.bf16 %v3125_v47, %v3124_v1 }
 0xb18   : > { %v3981_v50 = vpack.c.bf16 %v3117_v49, %v3116_v48 }
 0xb19   : > { %v2780_v4 = vmul.f32 1.442695, %v2777_v56 }
 0xb1b   : > { %4289 = vpow2.f32 %v2780_v4 }
 0xb21   : > { %v4288_v5 = vpop.eup %4287 }
 0xb22   : > { %v2782_v39 = vsel %vm1530_vm2, %v4288_v5, 0.0 }
 0xb23   : > { %2783 = vadd.xlane.f32.xlu0 %v2782_v39 }
 0xb25   : > { %v4290_v8 = vpop.eup %4289 }
 0xb26   : > { %v2785_v6 = vsel %vm1530_vm2, %v4290_v8, 0.0 }
 0xb27   : > { %2786 = vadd.xlane.f32.xlu0 %v2785_v6 }
 0xb5f   : > { %v3814_v7 = vpop.f32.mrb[10].mxu0 }
 0xb60   : > { %v2584_v10 = vpop.f32.mrb[11].mxu0 }
 0xb61   : > { %3817 = vmatprep.mubr.msk.f32.mxu0 %vm1521_vm1, %v2584_v10 }
 0xb62   : > { %3818 = vmatmul.mubr.msk.f32.vlgmr.msra.gmra.mrb[8].mxu0 %vm1521_vm1, %v3814_v7  ;;  %v3562_v7 = vld [vmem:[%s5553_s17] ss:$0 sm:$0xff] }
 0xb63   : > { %3964 = vmatpush3.bf16.msra.mxu0 %v3961_v63  ;;  %v3993_v63 = vpack.c.bf16 %v3123_v61, %v3122_v60 }
 0xb64   : > { %3834 = vmatprep.subr.mxu0 %v2879_v3 }
 0xbb0   : > { %v2784_v12 = vpop.xlane.xlu0 %2783 }
 0xbb1   : > { %4291 = vrcp.f32 %v2784_v12 }
 0xbb4   : > { %v2787_v13 = vpop.xlane.xlu0 %2786 }
 0xbb5   : > { %4293 = vrcp.f32 %v2787_v13 }
 0xbbb   : > { %v4292_v15 = vpop.eup %4291 }
 0xbbc   : > { %v2790_v16 = vmul.f32 %v4292_v15, %v4288_v5 }
 0xbbe   : > { %3831 = vmatprep.mubr.msk.f32.mxu0 %vm1530_vm2, %v2790_v16 }
 0xbbf   : > { %v4294_v51 = vpop.eup %4293 }
 0xbc0   : > { %v2791_v14 = vmul.f32 %v4294_v51, %v4290_v8 }
 0xbc2   : > { %3832 = vmatmul.mubr.msk.f32.vlgmr.msra.gmra.mrb[12].mxu0 %vm1530_vm2, %v2791_v14 }
 0xbc3   : > { %3835 = vmatpush3.msra.mxu0 %v2879_v3  ;;  %v3563_v3 = vld [vmem:[%s5554_s18] ss:$0 sm:$0xff] }
 0xbc4   : > { %3974 = vmatprep.subr.bf16.mxu0 %v3973_v43 }
 0xc95   : > { %v3833_v17 = vpop.f32.mrb[12].mxu0 }
 0xc96   : > { %v2870_v18 = vpop.f32.mrb[13].mxu0 }
 0xc97   : > { %3836 = vmatprep.mubr.msk.f32.mxu0 %vm1521_vm1, %v2870_v18  ;;  %v3127_v18 = vld [vmem:[%s5557_s21 + $0x78] sm:$0xff] }
 0xc98   : > { %3837 = vmatmul.mubr.msk.f32.vlgmr.msra.gmra.mrb[8].mxu0 %vm1521_vm1, %v3833_v17  ;;  %v3126_v17 = vld [vmem:[%s5557_s21 + $0x70] sm:$0xff] }
 0xc99   : > { %3976 = vmatpush3.bf16.msra.mxu0 %v3973_v43 }
 0xc9a   : > { %3978 = vmatprep.subr.bf16.mxu0 %v3977_v46 }
 0xc9d   : > { %3980 = vmatpush3.bf16.msra.mxu0 %v3977_v46 }
 0xc9e   : > { %3982 = vmatprep.subr.bf16.mxu0 %v3981_v50 }
 0xca1   : > { %3984 = vmatpush3.bf16.msra.mxu0 %v3981_v50 }
 0xca2   : > { %3986 = vmatprep.subr.bf16.mxu0 %v3985_v55 }
 0xca5   : > { %3988 = vmatpush3.bf16.msra.mxu0 %v3985_v55  ;;  %v3569_v55 = vld [vmem:[%s5652_s6] ss:$0 sm:$0xff] }
 0xca6   : > { %3990 = vmatprep.subr.bf16.mxu0 %v3989_v59 }
 0xca9   : > { %3992 = vmatpush3.bf16.msra.mxu0 %v3989_v59 }
 0xcaa   : > { %3994 = vmatprep.subr.bf16.mxu0 %v3993_v63 }
 0xcad   : > { %3996 = vmatpush3.bf16.msra.mxu0 %v3993_v63 }
 0xcae   : > { %3998 = vmatprep.subr.bf16.mxu0 %v3997_v53 }
 0xcb1   : > { %4000 = vmatpush3.bf16.msra.mxu0 %v3997_v53 }
 0xd6b   : > { %v3838_v45 = vpop.f32.mrb[8].mxu0 }
 0xd6c   : > { %v2971_v23 = vadd.f32 %v3838_v45, %v3561_v25  ;;  %v2952_v26 = vpop.f32.mrb[9].mxu0  ;;  %v3564_v45 = vld [vmem:[%s5648_s23] ss:$0 sm:$0xff]  ;;  %s934_s23 = scalar_lea.vmem [#allocation19], %s3492_s9  ;;  %s4587_s9 = sshll.u32 %s4698_s20, 4  ;;  %s4588_s9 = int_to_ptr.vmem [resolvable:$false] %s4587_s9 }
 0xd6d   : > { %v2970_v20 = vadd.f32 %v3561_v25, %v2952_v26  ;;  %v4001_v25 = vpack.c.bf16 %v3127_v18, %v3126_v17  ;;  %s3272_s5 = sshll.u32 %s934_s23, 4  ;;  %s4589_s8 = scalar_lea.vmem %s4588_s9, 512  ;;  %s5492_s5 = int_to_ptr.vmem [resolvable:$true] %s3272_s5 }
 0xd6e   : > { %v2973_v27 = vadd.f32 %v2971_v23, %v5294_v0  ;;  %s4583_s7 = scalar_lea.vmem %s5492_s5, 256  ;;  %p4590_p3 = scmp.lt.s32.totalorder %s5492_s5, %s4588_s9 }
 0xd6f   : > { %v2972_v21 = vadd.f32 %v2970_v20, %v5290_v62  ;;  %4002 = vmatprep.subr.bf16.mxu0 %v4001_v25  ;;  %p4584_p5 = scmp.ne.s32.totalorder %s5492_s5, %s4583_s7  ;;  %p4591_p4 = scmp.lt.s32.totalorder %s4589_s8, %s4583_s7 }
 0xd70   : > { %v2979_v22 = vsel %vm974_vm0, %v2973_v27, 0.0  ;;  %4004 = vmatpush3.bf16.msra.mxu0 %v4001_v25 }
 0xd71   : > { %2980 = vadd.xlane.f32.xlu1 %v2979_v22  ;;  %v2976_v28 = vsel %vm974_vm0, %v2972_v21, 0.0  ;;  %p4585_p0 = pnand %p4584_p5, %p5655_p10  ;;  %p4592_p12 = por %p4591_p4, %p4590_p3 }
 0xd72   : > { %2977 = vadd.xlane.f32.xlu0 %v2976_v28  ;;  %v3567_v28 = vld [vmem:[%s5649_s0] ss:$0 sm:$0xff] }
 0xd73   : > { %p4586_p2 = pneg %p4585_p0 }
 0xd75   : > { %p4593_p7 = pnand %p4592_p12, %p4586_p2 }
 0xdfe   : > { %v2981_v29 = vpop.xlane.xlu1 %2980 }
 0xdff   : > { %v2983_v9 = vmul.f32 0.03125, %v2981_v29  ;;  %v2978_v24 = vpop.xlane.xlu0 %2977 }
 0xe00   : > { %v2982_v30 = vmul.f32 0.03125, %v2978_v24 }
 0xe01   : > { %v5393_v31 = vsub.f32 %v2973_v27, %v2983_v9 }
 0xe02   : > { %v2984_v32 = vsub.f32 %v2972_v21, %v2982_v30 }
 0xe03   : > { %v2987_v0 = vmul.f32 %v5393_v31, %v5393_v31 }
 0xe04   : > { %v2986_v33 = vmul.f32 %v2984_v32, %v2984_v32 }
 0xe05   : > { %v2991_v62 = vsel %vm974_vm0, %v2987_v0, 0.0 }
 0xe06   : > { %v2988_v34 = vsel %vm974_vm0, %v2986_v33, 0.0 }
 0xe07   : > { %2989 = vadd.xlane.f32.xlu0 %v2988_v34 }
 0xe0b   : > { %2992 = vadd.xlane.f32.xlu0 %v2991_v62 }
 0xe94   : > { %v2990_v2 = vpop.xlane.xlu0 %2989 }
 0xe95   : > { %v2994_v56 = vmul.f32 0.03125, %v2990_v2 }
 0xe97   : > { %v2996_v4 = vadd.f32 1e-05, %v2994_v56 }
 0xe98   : > { %v2993_v5 = vpop.xlane.xlu0 %2992 }
 0xe99   : > { %4295 = vrsqrt.f32 %v2996_v4  ;;  %v2995_v39 = vmul.f32 0.03125, %v2993_v5 }
 0xe9b   : > { %v2997_v8 = vadd.f32 1e-05, %v2995_v39 }
 0xe9d   : > { %4297 = vrsqrt.f32 %v2997_v8 }
 0xea3   : > { %v4296_v6 = vpop.eup %4295 }
 0xea4   : > { %v3000_v10 = vmul.f32 %v4296_v6, %v2984_v32 }
 0xea6   : > { %v3008_v12 = vmul.f32 %v3562_v7, %v3000_v10 }
 0xea7   : > { %v4298_v13 = vpop.eup %4297 }
 0xea8   : > { %v3001_v15 = vmul.f32 %v4298_v13, %v5393_v31  ;;  %v3016_v16 = vadd.f32 %v3563_v3, %v3008_v12 }
 0xeaa   : > { %v3009_v51 = vmul.f32 %v3562_v7, %v3001_v15  ;;  %3847 = vmatprep.mubr.msk.f32.mxu1 %vm974_vm0, %v3016_v16 }
 0xeac   : > { %v3017_v14 = vadd.f32 %v3563_v3, %v3009_v51 }
 0xeae   : > { %3848 = vmatmul.mubr.msk.f32.vlgmr.msra.gmra.mrb[26].mxu1 %vm974_vm0, %v3017_v14 }
 0xf81   : > { %v3849_v23 = vpop.f32.mrb[26].mxu1 }
 0xf82   : > { %v3107_v26 = vadd.f32 %v3849_v23, %v3564_v45  ;;  %v3101_v20 = vpop.f32.mrb[27].mxu1 }
 0xf83   : > { %v3102_v27 = vadd.f32 %v3564_v45, %v3101_v20 }
 0xf84   : > { %v3111_v22 = vmax.f32 %v3107_v26, 0.0 }
 0xf85   : > { %v3110_v21 = vmax.f32 %v3102_v27, 0.0 }
 0xf87   : > { %3882 = vmatprep.mubr.f32.mxu0 %v3110_v21 }
 0xf88   : > { %3883 = vmatmul.mubr.f32.vlgmr.msra.gmra.mrb[14].mxu0 %v3111_v22 }
0x105b   : > { %v3884_v29 = vpop.f32.mrb[14].mxu0 }
0x105c   : > { %v3201_v9 = vpop.f32.mrb[15].mxu0  ;;  %v3207_v24 = vadd.f32 %v3884_v29, %v3567_v28 }
0x105d   : > { %v3202_v30 = vadd.f32 %v3567_v28, %v3201_v9 }
0x105e   : > { %v3211_v33 = vadd.f32 %v3207_v24, %v3017_v14 }
0x105f   : > { %v3210_v31 = vadd.f32 %v3202_v30, %v3016_v16 }
0x1060   : > { %v3217_v34 = vsel %vm974_vm0, %v3211_v33, 0.0 }
0x1061   : > { %v3214_v32 = vsel %vm974_vm0, %v3210_v31, 0.0 }
0x1062   : > { %3215 = vadd.xlane.f32.xlu0 %v3214_v32 }
0x1066   : > { %3218 = vadd.xlane.f32.xlu0 %v3217_v34 }
0x10ef   : > { %v3216_v0 = vpop.xlane.xlu0 %3215 }
0x10f0   : > { %v3220_v62 = vmul.f32 0.03125, %v3216_v0 }
0x10f2   : > { %v3222_v35 = vsub.f32 %v3210_v31, %v3220_v62 }
0x10f3   : > { %v3219_v36 = vpop.xlane.xlu0 %3218 }
0x10f4   : > { %v3221_v37 = vmul.f32 0.03125, %v3219_v36  ;;  %v3224_v19 = vmul.f32 %v3222_v35, %v3222_v35 }
0x10f6   : > { %v3223_v11 = vsub.f32 %v3211_v33, %v3221_v37  ;;  %v3226_v38 = vsel %vm974_vm0, %v3224_v19, 0.0 }
0x10f7   : > { %3227 = vadd.xlane.f32.xlu0 %v3226_v38 }
0x10f8   : > { %v3225_v40 = vmul.f32 %v3223_v11, %v3223_v11 }
0x10fa   : > { %v3229_v41 = vsel %vm974_vm0, %v3225_v40, 0.0 }
0x10fb   : > { %3230 = vadd.xlane.f32.xlu0 %v3229_v41 }
0x1184   : > { %v3228_v42 = vpop.xlane.xlu0 %3227 }
0x1185   : > { %v3232_v43 = vmul.f32 0.03125, %v3228_v42 }
0x1187   : > { %v3234_v44 = vadd.f32 1e-05, %v3232_v43 }
0x1188   : > { %v3231_v46 = vpop.xlane.xlu0 %3230 }
0x1189   : > { %4299 = vrsqrt.f32 %v3234_v44  ;;  %v3233_v48 = vmul.f32 0.03125, %v3231_v46 }
0x118b   : > { %v3235_v49 = vadd.f32 1e-05, %v3233_v48 }
0x118d   : > { %4301 = vrsqrt.f32 %v3235_v49 }
0x1193   : > { %v4300_v50 = vpop.eup %4299 }
0x1194   : > { %v3238_v54 = vmul.f32 %v4300_v50, %v3222_v35 }
0x1196   : > { %v3246_v57 = vmul.f32 %v3568_v52, %v3238_v54 }
0x1197   : > { %v4302_v58 = vpop.eup %4301 }
0x1198   : > { %v3254_v59 = vadd.f32 %v3569_v55, %v3246_v57  ;;  %v3239_v60 = vmul.f32 %v4302_v58, %v3223_v11 }
0x119a   : > { %v3247_v61 = vmul.f32 %v3568_v52, %v3239_v60  ;;  %3256 = vst.msk [vmem:[%s934_s23] sm:$0xff] %vm974_vm0, %v3254_v59 }
0x119c   : > { %v3255_v63 = vadd.f32 %v3569_v55, %v3247_v61 }
0x119e   : > { %3257 = vst.msk [vmem:[%s934_s23 + $0x8] sm:$0xff] %vm974_vm0, %v3255_v63 }
0x119f   : > { %4596 = shalt.err (!%p4593_p7)
}
0x11a0   : > { %s4597_s3 = scalar_lea.hbm %s5490_s30, 256  ;;  %s4601_s27 = scalar_lea.hbm %s5654_s4, 512 }
0x11a1   : > { %p4598_p8 = scmp.ne.s32.totalorder %s5490_s30, %s4597_s3  ;;  %p4602_p1 = scmp.lt.u32.totalorder %s5490_s30, %s5654_s4 }
0x11a2   : > { %p4603_p6 = scmp.lt.u32.totalorder %s4601_s27, %s4597_s3  ;;  %p4605_p5 = scmp.lt.u32.totalorder %s4597_s3, %s5490_s30 }
0x11a3   : > { %p4599_p11 = pnand %p4598_p8, %p5655_p10 }
0x11a4   : > { %p4604_p9 = por %p4603_p6, %p4602_p1 }
0x11a5   : > { %p4600_p13 = pneg %p4599_p11 }
0x11a6   : > { %p4606_p0 = por %p4605_p5, %p4604_p9 }
0x11a8   : > { %p4607_p2 = pnand %p4606_p0, %p4600_p13 }
0x11aa   : > { %4610 = shalt.err (!%p4607_p2)
}
0x11ab   : > { %s4699_s0 = smov 128   ;;  %s4700_s7 = smov 8  }
0x11ac   : > { %4051 = dma.vmem_to_hbm [thread:$0]  (%p5655_p10), %s5492_s5, 256, %s5490_s30, %s5495_s11, %s4699_s0, %s4699_s0, %s4700_s7  }
0x11ad PF: > { %s5656_s20 = sld [smem:[#allocation30_spill]]  ;;  %s5657_s9 = sld [smem:[#allocation27_spill]] }
0x11ae   : > { %s5658_s8 = sld [smem:[#allocation34_spill]] }
0x11b3   : > { %p4108_p3 = scmp.ge.s32.totalorder %s5656_s20, 2  ;;  %s3287_s1 = sand.u32 1, %s5657_s9  }
0x11b4   : > { %p5659_p4 = scmp.ne.s32.totalorder %s5658_s8, 0  ;;  %s3288_s3 = scalar_lea.sflag [#allocation4], %s3287_s1 }
0x11b6   : > { %p4085_p12 = pnand %p4108_p3, %p5659_p4 }
0x11b8   : > { %4652 = dma.done.wait (!%p4085_p12), %s3288_s3, 256  }
0x11b9   : > { %4654 = vsyncadd (!%p4085_p12), %s3288_s3, 4294967040  ;;  %s5660_s30 = sld [smem:[#allocation31_spill]]  ;;  %s5661_s6 = sld [smem:[#allocation28_spill]] }
0x11ba   : > { %s5662_s2 = sld [smem:[#allocation29_spill]]  ;;  %s5663_s27 = sld [smem:[#allocation32_spill]] }
0x11bf   : > { %p41_p7 = scmp.ge.s32.totalorder %s5660_s30, 4   ;;  %5664 = sst [smem:[#allocation27_spill]] %s5661_s6 }
0x11c0   : > { %s5665_s6 = smov %s5663_s27 }
0x11c1   :  { %43 = sbr.rel (!%p41_p7) target bundleno = 27 (0x1b), region = 205 }
0x11c8   :  { %3293 = vsyncpa [#allocation3], 1 }
0x11c9   :  { %3295 = vsyncpa [#allocation3 + $0x1], 1 }
0x11ca   :  { %3296 = vsyncpa [#allocation6], 1 }
0x11cb   :  { %3297 = vsyncpa [#allocation9], 1 }
0x11cc   :  { %3298 = vsyncpa [#allocation12], 1 }
0x11cd   :  { %3299 = vsyncpa [#allocation15], 1 }
0x11ce   :  { %3300 = vsyncpa [#allocation18], 1 }
0x11cf   :  { %3301 = vsyncpa [#allocation4], 1 }
0x11d0   :  { %3303 = vsyncpa [#allocation4 + $0x1], 1 }

</bundles_post_ra>
